<compile_context>
chip_gen: v7x
topology: tpu7x:2x2x1
jax: 0.10.0
libtpu: 0.0.40
codegen_flags: <defaults>
</compile_context>

<pallas_src>
import functools

import jax
import jax.numpy as jnp
from jax import lax
from jax.experimental import pallas as pl
from jax.experimental.pallas import tpu as pltpu

LANE = 128
_EPS = 1e-5
_NEG_SLOPE = 0.02
_TM = 256                         # im2col rows (pixels) per grid step
_VMEM_LIMIT = 32 * 1024 * 1024    # fits scoped VMEM on v5e/v6e/v7x with headroom


def _round_up(x, m):
    return (x + m - 1) // m * m


# ---------------------------------------------------------------------------
# Pass 1: one im2col GEMM per row tile + per-tile BatchNorm partial statistics.
# ---------------------------------------------------------------------------
def _conv_gemm_stats_kernel(p_ref, w_ref, conv_ref, stats_ref):
    # p_ref:     (TM, K_pad)     bf16 im2col patch tile
    # w_ref:     (K_pad, C_pad)  bf16 repacked conv weights (resident block)
    # conv_ref:  (TM, C_pad)     f32 conv output tile
    # stats_ref: (8, C_pad)      f32: row 0 = per-channel sum, row 1 = sum of squares
    acc = jnp.dot(p_ref[...], w_ref[...], preferred_element_type=jnp.float32)
    conv_ref[...] = acc
    s = jnp.sum(acc, axis=0, keepdims=True)             # (1, C_pad)
    ssq = jnp.sum(acc * acc, axis=0, keepdims=True)     # (1, C_pad)
    row = lax.broadcasted_iota(jnp.int32, stats_ref.shape, 0)
    stats_ref[...] = jnp.where(row == 0, s, jnp.where(row == 1, ssq, 0.0))


# ---------------------------------------------------------------------------
# Pass 2: folded BatchNorm (scale/shift) + optional LeakyReLU / sigmoid.
# ---------------------------------------------------------------------------
def _bn_act_kernel(conv_ref, scale_ref, shift_ref, o_ref, *, lrelu, sigmoid):
    y = conv_ref[...] * scale_ref[...] + shift_ref[...]
    if lrelu:
        y = jnp.where(y > 0, y, _NEG_SLOPE * y)
    if sigmoid:
        y = 1.0 / (1.0 + jnp.exp(-y))
    o_ref[...] = y


# ---------------------------------------------------------------------------
# ChannelGate: per-(n, c) sigmoid(MLP(spatial max)) scaling of x.
# Lane-dense (N, C, H*W) layout; MLP done as VPU broadcast-multiply-reduce
# (contraction depth is far below MXU depth for these channel counts).
# ---------------------------------------------------------------------------
def _channel_gate_kernel(x_ref, w1_ref, b1_ref, w2_ref, b2_ref, o_ref):
    x = x_ref[...]                                      # (N, C, H*W)
    m = jnp.max(x, axis=-1)                             # (N, C) spatial max-pool
    h = jnp.sum(m[:, :, None] * w1_ref[...][None, :, :], axis=1) + b1_ref[...]
    h = jnp.maximum(h, 0.0)                             # ReLU
    z = jnp.sum(h[:, :, None] * w2_ref[...][None, :, :], axis=1) + b2_ref[...]
    s = 1.0 / (1.0 + jnp.exp(-z))                       # sigmoid, (N, C)
    o_ref[...] = x * s[:, :, None]
    # NOTE: the reference also computes an avg-pool branch whose result is
    # never used (dead code), so it is intentionally omitted.


def channel_gate(x_nchw, w1, b1, w2, b2):
    n, c, h, w = x_nchw.shape
    hidden = w1.shape[1]
    x_flat = x_nchw.reshape(n, c, h * w)
    out = pl.pallas_call(
        _channel_gate_kernel,
        out_shape=jax.ShapeDtypeStruct((n, c, h * w), jnp.float32),
        in_specs=[pl.BlockSpec(memory_space=pltpu.MemorySpace.VMEM)] * 5,
        out_specs=pl.BlockSpec(memory_space=pltpu.MemorySpace.VMEM),
        compiler_params=pltpu.CompilerParams(vmem_limit_bytes=_VMEM_LIMIT),
    )(x_flat, w1, b1.reshape(1, hidden), w2, b2.reshape(1, c))
    return out.reshape(n, c, h, w)


# ---------------------------------------------------------------------------
# Fused ConvBatchBlock: Conv2d(bias=False) + BatchNorm2d(train stats) + act.
# ---------------------------------------------------------------------------
def _im2col(x_nhwc, kh, kw, ph, pw):
    """stride=1 / dilation=1 patch extraction (pure data movement)."""
    n, h, w, cin = x_nhwc.shape
    x_pad = jnp.pad(x_nhwc, ((0, 0), (ph, ph), (pw, pw), (0, 0)))
    ho = h + 2 * ph - (kh - 1)
    wo = w + 2 * pw - (kw - 1)
    cols = []
    for i in range(kh):
        for j in range(kw):
            cols.append(x_pad[:, i:i + ho, j:j + wo, :])
    patches = jnp.concatenate(cols, axis=-1)            # (n, ho, wo, kh*kw*cin)
    return patches.reshape(n * ho * wo, kh * kw * cin), ho, wo


def conv_batch_block(x_nhwc, weight, gamma, beta, *, padding, lrelu, sigmoid=False):
    """x_nhwc: (N, H, W, Cin) f32.  weight: (Cout, Cin, KH, KW) torch layout."""
    n, h, w, cin = x_nhwc.shape
    cout, _, kh, kw = weight.shape
    ph, pw = padding

    patches, ho, wo = _im2col(x_nhwc, kh, kw, ph, pw)
    m, k = patches.shape
    tm = min(_TM, _round_up(m, 8))
    m_pad = _round_up(m, tm)
    k_pad = _round_up(k, LANE)
    c_pad = _round_up(cout, LANE)
    num_tiles = m_pad // tm

    # bf16 MXU inputs (f32 accumulation); zero padding keeps conv/stat math exact.
    patches = jnp.pad(patches, ((0, m_pad - m), (0, k_pad - k))).astype(jnp.bfloat16)
    w_mat = jnp.transpose(weight, (2, 3, 1, 0)).reshape(kh * kw * cin, cout)
    w_mat = jnp.pad(w_mat, ((0, k_pad - k), (0, c_pad - cout))).astype(jnp.bfloat16)

    conv_out, stats = pl.pallas_call(
        _conv_gemm_stats_kernel,
        grid=(num_tiles,),
        in_specs=[
            pl.BlockSpec((tm, k_pad), lambda i: (i, 0)),
            pl.BlockSpec((k_pad, c_pad), lambda i: (0, 0)),
        ],
        out_specs=[
            pl.BlockSpec((tm, c_pad), lambda i: (i, 0)),
            pl.BlockSpec((8, c_pad), lambda i: (i, 0)),
        ],
        out_shape=[
            jax.ShapeDtypeStruct((m_pad, c_pad), jnp.float32),
            jax.ShapeDtypeStruct((num_tiles * 8, c_pad), jnp.float32),
        ],
        compiler_params=pltpu.CompilerParams(
            dimension_semantics=("parallel",),
            vmem_limit_bytes=_VMEM_LIMIT),
    )(patches, w_mat)

    # O(Cout) glue: reduce per-tile partials to global train-mode batch stats
    # and fold BN into one per-channel scale/shift (zero-padded rows contribute
    # exactly zero to both sums).  One-pass E[x^2]-E[x]^2 kept in f32.
    stats = stats.reshape(num_tiles, 8, c_pad)
    total = jnp.sum(stats[:, 0, :], axis=0)
    total_sq = jnp.sum(stats[:, 1, :], axis=0)
    mean = total / m
    var = jnp.maximum(total_sq / m - mean * mean, 0.0)
    inv_std = lax.rsqrt(var + _EPS)
    gamma_p = jnp.pad(gamma.astype(jnp.float32), (0, c_pad - cout))
    beta_p = jnp.pad(beta.astype(jnp.float32), (0, c_pad - cout))
    scale = (gamma_p * inv_std).reshape(1, c_pad)
    shift = (beta_p - mean * gamma_p * inv_std).reshape(1, c_pad)

    out = pl.pallas_call(
        functools.partial(_bn_act_kernel, lrelu=lrelu, sigmoid=sigmoid),
        grid=(num_tiles,),
        in_specs=[
            pl.BlockSpec((tm, c_pad), lambda i: (i, 0)),
            pl.BlockSpec((1, c_pad), lambda i: (0, 0)),
            pl.BlockSpec((1, c_pad), lambda i: (0, 0)),
        ],
        out_specs=pl.BlockSpec((tm, c_pad), lambda i: (i, 0)),
        out_shape=jax.ShapeDtypeStruct((m_pad, c_pad), jnp.float32),
        compiler_params=pltpu.CompilerParams(
            dimension_semantics=("parallel",),
            vmem_limit_bytes=_VMEM_LIMIT),
    )(conv_out, scale, shift)

    return out[:m, :cout].reshape(n, ho, wo, cout)


# ---------------------------------------------------------------------------
# CBAM2 forward: ChannelGate -> conv1 (3x3 CBB) -> SpatialGate2.
# ---------------------------------------------------------------------------
def cbam2_forward(x_nchw, p):
    gated = channel_gate(x_nchw, p["w1"], p["b1"], p["w2"], p["b2"])
    # Internal conv layout is NHWC (one transpose in, two small transposes out
    # to keep the PyTorch NCHW I/O contract).
    xg = jnp.transpose(gated, (0, 2, 3, 1))
    # conv1: 3x3 ConvBatchBlock
    x1 = conv_batch_block(xg, p["c1_w"], p["c1_g"], p["c1_b"],
                          padding=(1, 1), lrelu=True)
    # SpatialGate2 branch e: (7,1) C->C then (1,7) C->1
    e1 = conv_batch_block(x1, p["ea_w"], p["ea_g"], p["ea_b"],
                          padding=(3, 0), lrelu=True)
    e1 = conv_batch_block(e1, p["eb_w"], p["eb_g"], p["eb_b"],
                          padding=(0, 3), lrelu=True)
    # SpatialGate2 branch e2: (1,7) C->C then (7,1) C->1
    e2 = conv_batch_block(x1, p["fa_w"], p["fa_g"], p["fa_b"],
                          padding=(0, 3), lrelu=True)
    e2 = conv_batch_block(e2, p["fb_w"], p["fb_g"], p["fb_b"],
                          padding=(3, 0), lrelu=True)
    feat = jnp.concatenate([e1, e2], axis=-1)             # (N, H, W, 2)
    # Final 1x1 CBB (relu=False) with sigmoid fused into pass 2.
    sc = conv_batch_block(feat, p["sp_w"], p["sp_g"], p["sp_b"],
                          padding=(0, 0), lrelu=False, sigmoid=True)
    x_out = jnp.transpose(x1, (0, 3, 1, 2))
    x_out2 = jnp.transpose(sc, (0, 3, 1, 2))
    return x_out, x_out2


# ---------------------------------------------------------------------------
# Pure-JAX f32 reference (matches PyTorch semantics).
# ---------------------------------------------------------------------------
def _cbb_ref(x_nhwc, weight, gamma, beta, padding, lrelu, sigmoid=False):
    w_hwio = jnp.transpose(weight, (2, 3, 1, 0))
    conv = lax.conv_general_dilated(
        x_nhwc, w_hwio, window_strides=(1, 1),
        padding=((padding[0], padding[0]), (padding[1], padding[1])),
        dimension_numbers=("NHWC", "HWIO", "NHWC"))
    mean = jnp.mean(conv, axis=(0, 1, 2), keepdims=True)
    var = jnp.mean((conv - mean) ** 2, axis=(0, 1, 2), keepdims=True)
    y = (conv - mean) * lax.rsqrt(var + _EPS) * gamma + beta
    if lrelu:
        y = jnp.where(y > 0, y, _NEG_SLOPE * y)
    if sigmoid:
        y = jax.nn.sigmoid(y)
    return y


def _cbam2_ref(x_nchw, p):
    n, c, h, w = x_nchw.shape
    m = jnp.max(x_nchw.reshape(n, c, h * w), axis=-1)
    hid = jnp.maximum(m @ p["w1"] + p["b1"], 0.0)
    z = hid @ p["w2"] + p["b2"]
    s = jax.nn.sigmoid(z)
    gated = x_nchw * s[:, :, None, None]
    xg = jnp.transpose(gated, (0, 2, 3, 1))
    x1 = _cbb_ref(xg, p["c1_w"], p["c1_g"], p["c1_b"], (1, 1), True)
    e1 = _cbb_ref(x1, p["ea_w"], p["ea_g"], p["ea_b"], (3, 0), True)
    e1 = _cbb_ref(e1, p["eb_w"], p["eb_g"], p["eb_b"], (0, 3), True)
    e2 = _cbb_ref(x1, p["fa_w"], p["fa_g"], p["fa_b"], (0, 3), True)
    e2 = _cbb_ref(e2, p["fb_w"], p["fb_g"], p["fb_b"], (3, 0), True)
    feat = jnp.concatenate([e1, e2], axis=-1)
    sc = _cbb_ref(feat, p["sp_w"], p["sp_g"], p["sp_b"], (0, 0), False, True)
    return jnp.transpose(x1, (0, 3, 1, 2)), jnp.transpose(sc, (0, 3, 1, 2))


if __name__ == "__main__":
    key = jax.random.PRNGKey(0)
    ks = iter(jax.random.split(key, 32))

    N, C, H, W = 2, 4, 16, 16     # gate_channel = 4
    ratio = 2
    hidden = C // ratio

    def normal(shape, scale=0.1):
        return scale * jax.random.normal(next(ks), shape, dtype=jnp.float32)

    x = jax.random.normal(next(ks), (N, C, H, W), dtype=jnp.float32)

    p = {
        # ChannelGate MLP (Linear weights stored pre-transposed as (in, out))
        "w1": normal((C, hidden), 0.5), "b1": normal((hidden,), 0.1),
        "w2": normal((hidden, C), 0.5), "b2": normal((C,), 0.1),
        # conv1: 3x3, C->C
        "c1_w": normal((C, C, 3, 3)), "c1_g": 1.0 + normal((C,)), "c1_b": normal((C,)),
        # spatial_e: (7,1) C->C then (1,7) C->1
        "ea_w": normal((C, C, 7, 1)), "ea_g": 1.0 + normal((C,)), "ea_b": normal((C,)),
        "eb_w": normal((1, C, 1, 7)), "eb_g": 1.0 + normal((1,)), "eb_b": normal((1,)),
        # spatial_e2: (1,7) C->C then (7,1) C->1
        "fa_w": normal((C, C, 1, 7)), "fa_g": 1.0 + normal((C,)), "fa_b": normal((C,)),
        "fb_w": normal((1, C, 7, 1)), "fb_g": 1.0 + normal((1,)), "fb_b": normal((1,)),
        # spatial: 1x1, 2->1, relu=False (sigmoid applied by SpatialGate2)
        "sp_w": normal((1, 2, 1, 1)), "sp_g": 1.0 + normal((1,)), "sp_b": normal((1,)),
    }

    fwd = jax.jit(cbam2_forward)
    x_out, x_out2 = fwd(x, p)
    x_out, x_out2 = jax.block_until_ready((x_out, x_out2))

    ref_out, ref_out2 = _cbam2_ref(x, p)

    assert x_out.shape == (N, C, H, W), x_out.shape
    assert x_out2.shape == (N, 1, H, W), x_out2.shape
    err1 = float(jnp.max(jnp.abs(x_out - ref_out)))
    err2 = float(jnp.max(jnp.abs(x_out2 - ref_out2)))
    # bf16 MXU inputs (f32 accumulation / f32 BN stats) -> ~1e-2 level agreement.
    assert err1 < 5e-2 and err2 < 5e-2, (err1, err2)

    print("KERNEL_OK")
</pallas_src>

<mosaic_0001>
module attributes {stable_mosaic.version = 11 : i64} {
  func.func @_channel_gate_kernel(%arg0: memref<2x4x256xf32, #tpu.memory_space<vmem>>, %arg1: memref<4x2xf32, #tpu.memory_space<vmem>>, %arg2: memref<1x2xf32, #tpu.memory_space<vmem>>, %arg3: memref<2x4xf32, #tpu.memory_space<vmem>>, %arg4: memref<1x4xf32, #tpu.memory_space<vmem>>, %arg5: memref<2x4x256xf32, #tpu.memory_space<vmem>>) attributes {dimension_semantics = [], scalar_prefetch = 0 : i64, scratch_operands = 0 : i64, tpu.core_type = #tpu.core_type<tc>} {
    %c0 = arith.constant 0 : index
    %c0_0 = arith.constant 0 : index
    %c0_1 = arith.constant 0 : index
    %0 = vector.load %arg0[%c0, %c0_0, %c0_1] : memref<2x4x256xf32, #tpu.memory_space<vmem>>, vector<2x4x256xf32>
    %cst = arith.constant dense<0xFF800000> : vector<2x4xf32>
    %1 = vector.multi_reduction <maximumf>, %0, %cst [2] : vector<2x4x256xf32> to vector<2x4xf32>
    %2 = vector.shape_cast %1 : vector<2x4xf32> to vector<2x4x1xf32>
    %c0_2 = arith.constant 0 : index
    %c0_3 = arith.constant 0 : index
    %3 = vector.load %arg1[%c0_2, %c0_3] : memref<4x2xf32, #tpu.memory_space<vmem>>, vector<4x2xf32>
    %4 = vector.shape_cast %3 : vector<4x2xf32> to vector<1x4x2xf32>
    %5 = vector.broadcast %2 : vector<2x4x1xf32> to vector<2x4x2xf32>
    %6 = vector.broadcast %4 : vector<1x4x2xf32> to vector<2x4x2xf32>
    %7 = arith.mulf %5, %6 : vector<2x4x2xf32>
    %cst_4 = arith.constant dense<0.000000e+00> : vector<2x2xf32>
    %8 = vector.multi_reduction <add>, %7, %cst_4 [1] : vector<2x4x2xf32> to vector<2x2xf32>
    %c0_5 = arith.constant 0 : index
    %c0_6 = arith.constant 0 : index
    %9 = vector.load %arg2[%c0_5, %c0_6] : memref<1x2xf32, #tpu.memory_space<vmem>>, vector<1x2xf32>
    %10 = vector.broadcast %9 : vector<1x2xf32> to vector<2x2xf32>
    %11 = arith.addf %8, %10 : vector<2x2xf32>
    %cst_7 = arith.constant 0.000000e+00 : f32
    %12 = vector.broadcast %cst_7 : f32 to vector<2x2xf32>
    %13 = arith.maximumf %11, %12 : vector<2x2xf32>
    %14 = vector.shape_cast %13 : vector<2x2xf32> to vector<2x2x1xf32>
    %c0_8 = arith.constant 0 : index
    %c0_9 = arith.constant 0 : index
    %15 = vector.load %arg3[%c0_8, %c0_9] : memref<2x4xf32, #tpu.memory_space<vmem>>, vector<2x4xf32>
    %16 = vector.shape_cast %15 : vector<2x4xf32> to vector<1x2x4xf32>
    %17 = vector.broadcast %14 : vector<2x2x1xf32> to vector<2x2x4xf32>
    %18 = vector.broadcast %16 : vector<1x2x4xf32> to vector<2x2x4xf32>
    %19 = arith.mulf %17, %18 : vector<2x2x4xf32>
    %cst_10 = arith.constant dense<0.000000e+00> : vector<2x4xf32>
    %20 = vector.multi_reduction <add>, %19, %cst_10 [1] : vector<2x2x4xf32> to vector<2x4xf32>
    %c0_11 = arith.constant 0 : index
    %c0_12 = arith.constant 0 : index
    %21 = vector.load %arg4[%c0_11, %c0_12] : memref<1x4xf32, #tpu.memory_space<vmem>>, vector<1x4xf32>
    %22 = vector.broadcast %21 : vector<1x4xf32> to vector<2x4xf32>
    %23 = arith.addf %20, %22 : vector<2x4xf32>
    %cst_13 = arith.constant 0.000000e+00 : f32
    %24 = vector.broadcast %cst_13 : f32 to vector<2x4xf32>
    %25 = arith.subf %24, %23 : vector<2x4xf32>
    %26 = math.exp %25 : vector<2x4xf32>
    %cst_14 = arith.constant 1.000000e+00 : f32
    %27 = vector.broadcast %cst_14 : f32 to vector<2x4xf32>
    %28 = arith.addf %27, %26 : vector<2x4xf32>
    %cst_15 = arith.constant 1.000000e+00 : f32
    %29 = vector.broadcast %cst_15 : f32 to vector<2x4xf32>
    %30 = arith.divf %29, %28 : vector<2x4xf32>
    %31 = vector.shape_cast %30 : vector<2x4xf32> to vector<2x4x1xf32>
    %32 = vector.broadcast %31 : vector<2x4x1xf32> to vector<2x4x256xf32>
    %33 = arith.mulf %0, %32 : vector<2x4x256xf32>
    %c0_16 = arith.constant 0 : index
    %c0_17 = arith.constant 0 : index
    %c0_18 = arith.constant 0 : index
    %34 = vector.load %arg5[%c0_16, %c0_17, %c0_18] : memref<2x4x256xf32, #tpu.memory_space<vmem>>, vector<2x4x256xf32>
    tpu.vector_store %arg5[%c0_16, %c0_17, %c0_18], %33 {strides = array<i32>} : memref<2x4x256xf32, #tpu.memory_space<vmem>>, vector<2x4x256xf32>,
    return
  }
}

module attributes {stable_mosaic.version = 11 : i64} {
  func.func @_bn_act_kernel(%arg0: i32, %arg1: memref<256x128xf32, #tpu.memory_space<vmem>>, %arg2: memref<1x128xf32, #tpu.memory_space<vmem>>, %arg3: memref<1x128xf32, #tpu.memory_space<vmem>>, %arg4: memref<256x128xf32, #tpu.memory_space<vmem>>) attributes {dimension_semantics = [#tpu.dimension_semantics<parallel>], iteration_bounds = array<i64: 2>, scalar_prefetch = 0 : i64, scratch_operands = 0 : i64, tpu.core_type = #tpu.core_type<tc>, window_params = [{transform_indices = @transform_0, window_bounds = array<i64: 256, 128>}, {pipeline_mode = #tpu.pipeline_mode<synchronous>, transform_indices = @transform_1, window_bounds = array<i64: 1, 128>}, {pipeline_mode = #tpu.pipeline_mode<synchronous>, transform_indices = @transform_2, window_bounds = array<i64: 1, 128>}, {transform_indices = @transform_3, window_bounds = array<i64: 256, 128>}]} {
    %c0 = arith.constant 0 : index
    %c0_0 = arith.constant 0 : index
    %0 = vector.load %arg1[%c0, %c0_0] : memref<256x128xf32, #tpu.memory_space<vmem>>, vector<256x128xf32>
    %c0_1 = arith.constant 0 : index
    %c0_2 = arith.constant 0 : index
    %1 = vector.load %arg2[%c0_1, %c0_2] : memref<1x128xf32, #tpu.memory_space<vmem>>, vector<1x128xf32>
    %2 = vector.broadcast %1 : vector<1x128xf32> to vector<256x128xf32>
    %3 = arith.mulf %0, %2 : vector<256x128xf32>
    %c0_3 = arith.constant 0 : index
    %c0_4 = arith.constant 0 : index
    %4 = vector.load %arg3[%c0_3, %c0_4] : memref<1x128xf32, #tpu.memory_space<vmem>>, vector<1x128xf32>
    %5 = vector.broadcast %4 : vector<1x128xf32> to vector<256x128xf32>
    %6 = arith.addf %3, %5 : vector<256x128xf32>
    %cst = arith.constant 0.000000e+00 : f32
    %7 = vector.broadcast %cst : f32 to vector<256x128xf32>
    %8 = arith.cmpf ogt, %6, %7 : vector<256x128xf32>
    %cst_5 = arith.constant 2.000000e-02 : f32
    %9 = vector.broadcast %cst_5 : f32 to vector<256x128xf32>
    %10 = arith.mulf %9, %6 : vector<256x128xf32>
    %11 = arith.select %8, %6, %10 : vector<256x128xi1>, vector<256x128xf32>
    %c0_6 = arith.constant 0 : index
    %c0_7 = arith.constant 0 : index
    %12 = vector.load %arg4[%c0_6, %c0_7] : memref<256x128xf32, #tpu.memory_space<vmem>>, vector<256x128xf32>
    tpu.vector_store %arg4[%c0_6, %c0_7], %11 {strides = array<i32>} : memref<256x128xf32, #tpu.memory_space<vmem>>, vector<256x128xf32>,
    return
  }
  func.func @transform_0(%arg0: i32) -> (i32, i32) {
    %c0_i32 = arith.constant 0 : i32
    %c0_i32_0 = arith.constant 0 : i32
    return %arg0, %c0_i32 : i32, i32
  }
  func.func @transform_1(%arg0: i32) -> (i32, i32) {
    %c0_i32 = arith.constant 0 : i32
    %c0_i32_0 = arith.constant 0 : i32
    %c0_i32_1 = arith.constant 0 : i32
    return %c0_i32, %c0_i32_0 : i32, i32
  }
  func.func @transform_2(%arg0: i32) -> (i32, i32) {
    %c0_i32 = arith.constant 0 : i32
    %c0_i32_0 = arith.constant 0 : i32
    %c0_i32_1 = arith.constant 0 : i32
    return %c0_i32, %c0_i32_0 : i32, i32
  }
  func.func @transform_3(%arg0: i32) -> (i32, i32) {
    %c0_i32 = arith.constant 0 : i32
    %c0_i32_0 = arith.constant 0 : i32
    return %arg0, %c0_i32 : i32, i32
  }
}

module attributes {stable_mosaic.version = 11 : i64} {
  func.func @_conv_gemm_stats_kernel(%arg0: i32, %arg1: memref<256x128xbf16, #tpu.memory_space<vmem>>, %arg2: memref<128x128xbf16, #tpu.memory_space<vmem>>, %arg3: memref<256x128xf32, #tpu.memory_space<vmem>>, %arg4: memref<8x128xf32, #tpu.memory_space<vmem>>) attributes {dimension_semantics = [#tpu.dimension_semantics<parallel>], iteration_bounds = array<i64: 2>, scalar_prefetch = 0 : i64, scratch_operands = 0 : i64, tpu.core_type = #tpu.core_type<tc>, window_params = [{transform_indices = @transform_0, window_bounds = array<i64: 256, 128>}, {pipeline_mode = #tpu.pipeline_mode<synchronous>, transform_indices = @transform_1, window_bounds = array<i64: 128, 128>}, {transform_indices = @transform_2, window_bounds = array<i64: 256, 128>}, {transform_indices = @transform_3, window_bounds = array<i64: 8, 128>}]} {
    %c0 = arith.constant 0 : index
    %c0_0 = arith.constant 0 : index
    %0 = vector.load %arg1[%c0, %c0_0] : memref<256x128xbf16, #tpu.memory_space<vmem>>, vector<256x128xbf16>
    %c0_1 = arith.constant 0 : index
    %c0_2 = arith.constant 0 : index
    %1 = vector.load %arg2[%c0_1, %c0_2] : memref<128x128xbf16, #tpu.memory_space<vmem>>, vector<128x128xbf16>
    %cst = arith.constant dense<0.000000e+00> : vector<256x128xf32>
    %2 = tpu.matmul %0, %1, %cst {dimension_numbers = #tpu.dot_dimension_numbers<[1], [0], [0], [1], [0, 0, 1, 1], [], []>} : vector<256x128xbf16>, vector<128x128xbf16>, vector<256x128xf32> -> vector<256x128xf32>
    %c0_3 = arith.constant 0 : index
    %c0_4 = arith.constant 0 : index
    %3 = vector.load %arg3[%c0_3, %c0_4] : memref<256x128xf32, #tpu.memory_space<vmem>>, vector<256x128xf32>
    tpu.vector_store %arg3[%c0_3, %c0_4], %2 {strides = array<i32>} : memref<256x128xf32, #tpu.memory_space<vmem>>, vector<256x128xf32>,
    %cst_5 = arith.constant dense<0.000000e+00> : vector<128xf32>
    %4 = vector.multi_reduction <add>, %2, %cst_5 [0] : vector<256x128xf32> to vector<128xf32>
    %5 = vector.shape_cast %4 : vector<128xf32> to vector<1x128xf32>
    %6 = arith.mulf %2, %2 : vector<256x128xf32>
    %cst_6 = arith.constant dense<0.000000e+00> : vector<128xf32>
    %7 = vector.multi_reduction <add>, %6, %cst_6 [0] : vector<256x128xf32> to vector<128xf32>
    %8 = vector.shape_cast %7 : vector<128xf32> to vector<1x128xf32>
    %9 = tpu.iota {dimensions = array<i32: 0>} : vector<8x128xi32>
    %c0_i32 = arith.constant 0 : i32
    %10 = vector.broadcast %c0_i32 : i32 to vector<8x128xi32>
    %11 = arith.cmpi eq, %9, %10 : vector<8x128xi32>
    %c1_i32 = arith.constant 1 : i32
    %12 = vector.broadcast %c1_i32 : i32 to vector<8x128xi32>
    %13 = arith.cmpi eq, %9, %12 : vector<8x128xi32>
    %cst_7 = arith.constant 0.000000e+00 : f32
    %14 = vector.shape_cast %8 : vector<1x128xf32> to vector<1x128xf32>
    %15 = vector.broadcast %14 : vector<1x128xf32> to vector<8x128xf32>
    %16 = vector.broadcast %cst_7 : f32 to vector<8x128xf32>
    %17 = arith.select %13, %15, %16 : vector<8x128xi1>, vector<8x128xf32>
    %18 = vector.shape_cast %5 : vector<1x128xf32> to vector<1x128xf32>
    %19 = vector.broadcast %18 : vector<1x128xf32> to vector<8x128xf32>
    %20 = arith.select %11, %19, %17 : vector<8x128xi1>, vector<8x128xf32>
    %c0_8 = arith.constant 0 : index
    %c0_9 = arith.constant 0 : index
    %21 = vector.load %arg4[%c0_8, %c0_9] : memref<8x128xf32, #tpu.memory_space<vmem>>, vector<8x128xf32>
    tpu.vector_store %arg4[%c0_8, %c0_9], %20 {strides = array<i32>} : memref<8x128xf32, #tpu.memory_space<vmem>>, vector<8x128xf32>,
    return
  }
  func.func @transform_0(%arg0: i32) -> (i32, i32) {
    %c0_i32 = arith.constant 0 : i32
    %c0_i32_0 = arith.constant 0 : i32
    return %arg0, %c0_i32 : i32, i32
  }
  func.func @transform_1(%arg0: i32) -> (i32, i32) {
    %c0_i32 = arith.constant 0 : i32
    %c0_i32_0 = arith.constant 0 : i32
    %c0_i32_1 = arith.constant 0 : i32
    return %c0_i32, %c0_i32_0 : i32, i32
  }
  func.func @transform_2(%arg0: i32) -> (i32, i32) {
    %c0_i32 = arith.constant 0 : i32
    %c0_i32_0 = arith.constant 0 : i32
    return %arg0, %c0_i32 : i32, i32
  }
  func.func @transform_3(%arg0: i32) -> (i32, i32) {
    %c0_i32 = arith.constant 0 : i32
    %c0_i32_0 = arith.constant 0 : i32
    return %arg0, %c0_i32 : i32, i32
  }
}

module attributes {stable_mosaic.version = 11 : i64} {
  func.func @_bn_act_kernel(%arg0: i32, %arg1: memref<256x128xf32, #tpu.memory_space<vmem>>, %arg2: memref<1x128xf32, #tpu.memory_space<vmem>>, %arg3: memref<1x128xf32, #tpu.memory_space<vmem>>, %arg4: memref<256x128xf32, #tpu.memory_space<vmem>>) attributes {dimension_semantics = [#tpu.dimension_semantics<parallel>], iteration_bounds = array<i64: 2>, scalar_prefetch = 0 : i64, scratch_operands = 0 : i64, tpu.core_type = #tpu.core_type<tc>, window_params = [{transform_indices = @transform_0, window_bounds = array<i64: 256, 128>}, {pipeline_mode = #tpu.pipeline_mode<synchronous>, transform_indices = @transform_1, window_bounds = array<i64: 1, 128>}, {pipeline_mode = #tpu.pipeline_mode<synchronous>, transform_indices = @transform_2, window_bounds = array<i64: 1, 128>}, {transform_indices = @transform_3, window_bounds = array<i64: 256, 128>}]} {
    %c0 = arith.constant 0 : index
    %c0_0 = arith.constant 0 : index
    %0 = vector.load %arg1[%c0, %c0_0] : memref<256x128xf32, #tpu.memory_space<vmem>>, vector<256x128xf32>
    %c0_1 = arith.constant 0 : index
    %c0_2 = arith.constant 0 : index
    %1 = vector.load %arg2[%c0_1, %c0_2] : memref<1x128xf32, #tpu.memory_space<vmem>>, vector<1x128xf32>
    %2 = vector.broadcast %1 : vector<1x128xf32> to vector<256x128xf32>
    %3 = arith.mulf %0, %2 : vector<256x128xf32>
    %c0_3 = arith.constant 0 : index
    %c0_4 = arith.constant 0 : index
    %4 = vector.load %arg3[%c0_3, %c0_4] : memref<1x128xf32, #tpu.memory_space<vmem>>, vector<1x128xf32>
    %5 = vector.broadcast %4 : vector<1x128xf32> to vector<256x128xf32>
    %6 = arith.addf %3, %5 : vector<256x128xf32>
    %cst = arith.constant 0.000000e+00 : f32
    %7 = vector.broadcast %cst : f32 to vector<256x128xf32>
    %8 = arith.subf %7, %6 : vector<256x128xf32>
    %9 = math.exp %8 : vector<256x128xf32>
    %cst_5 = arith.constant 1.000000e+00 : f32
    %10 = vector.broadcast %cst_5 : f32 to vector<256x128xf32>
    %11 = arith.addf %10, %9 : vector<256x128xf32>
    %cst_6 = arith.constant 1.000000e+00 : f32
    %12 = vector.broadcast %cst_6 : f32 to vector<256x128xf32>
    %13 = arith.divf %12, %11 : vector<256x128xf32>
    %c0_7 = arith.constant 0 : index
    %c0_8 = arith.constant 0 : index
    %14 = vector.load %arg4[%c0_7, %c0_8] : memref<256x128xf32, #tpu.memory_space<vmem>>, vector<256x128xf32>
    tpu.vector_store %arg4[%c0_7, %c0_8], %13 {strides = array<i32>} : memref<256x128xf32, #tpu.memory_space<vmem>>, vector<256x128xf32>,
    return
  }
  func.func @transform_0(%arg0: i32) -> (i32, i32) {
    %c0_i32 = arith.constant 0 : i32
    %c0_i32_0 = arith.constant 0 : i32
    return %arg0, %c0_i32 : i32, i32
  }
  func.func @transform_1(%arg0: i32) -> (i32, i32) {
    %c0_i32 = arith.constant 0 : i32
    %c0_i32_0 = arith.constant 0 : i32
    %c0_i32_1 = arith.constant 0 : i32
    return %c0_i32, %c0_i32_0 : i32, i32
  }
  func.func @transform_2(%arg0: i32) -> (i32, i32) {
    %c0_i32 = arith.constant 0 : i32
    %c0_i32_0 = arith.constant 0 : i32
    %c0_i32_1 = arith.constant 0 : i32
    return %c0_i32, %c0_i32_0 : i32, i32
  }
  func.func @transform_3(%arg0: i32) -> (i32, i32) {
    %c0_i32 = arith.constant 0 : i32
    %c0_i32_0 = arith.constant 0 : i32
    return %arg0, %c0_i32 : i32, i32
  }
}

</mosaic_0001>

<bundles_post_ra>
// kernel: cbam2_forward.13
= control target key start
LH: loop header
LB: loop body
LE: loop exit
PB: predicated region body
PF: predicated region fallthrough
CT: control target
= control target key end

     0   :  { %vm28_vm0 = vcmask 1043456   ;;  %vm42_vm1 = vcmask 11264   ;;  %v68_v21 = vlaneseq  ;;  %vm85_vm2 = vcmask 25600   ;;  %s241_s0 = inlined_call_operand.vmem [shape: f32[2,4,256], index: 0, kind: input, shape index: {}]   ;;  %s242_s1 = inlined_call_operand.vmem [shape: f32[4,2], index: 1, kind: input, shape index: {}]   ;;  %s243_s2 = inlined_call_operand.vmem [shape: f32[1,2], index: 2, kind: input, shape index: {}]   ;;  %s244_s3 = inlined_call_operand.vmem [shape: f32[2,4], index: 3, kind: input, shape index: {}]   ;;  %s245_s4 = inlined_call_operand.vmem [shape: f32[1,4], index: 4, kind: input, shape index: {}]   ;;  %s246_s5 = inlined_call_operand.vmem [shape: f32[2,4,256], index: 5, kind: output, shape index: {}]  }
   0x1   :  { %v208_v0 = vld [vmem:[%s241_s0] sm:$0xff]  ;;  %v213_v1 = vld [vmem:[%s241_s0 + $0x8] sm:$0xff] }
   0x2   :  { %v24_v2 = vcombine.high %v208_v0, %v208_v0  ;;  %v29_v3 = vsel %vm28_vm0, %v208_v0, -inf  ;;  %v25_v4 = vcombine.high %v213_v1, %v213_v1  ;;  %v34_v6 = vsel %vm28_vm0, %v213_v1, -inf  ;;  %v39_v10 = vld [vmem:[%s242_s1] sm:$0xf] }
   0x3   :  { %v69_v26 = vshrl.u32 %v68_v21, 7  ;;  %v161_v27 = vld [vmem:[%s243_s2] ss:$0 sm:$0xff] }
   0x4   :  { %v30_v5 = vsel %vm28_vm0, %v24_v2, -inf  ;;  %v35_v7 = vsel %vm28_vm0, %v25_v4, -inf  ;;  %v82_v39 = vld [vmem:[%s244_s3] sm:$0x3] }
   0x5   :  { %v31_v8 = vmax.f32 %v29_v3, %v30_v5  ;;  %v36_v9 = vmax.f32 %v34_v6, %v35_v7  ;;  %v70_v32 = vsub.s32 0, %v69_v26  ;;  %v162_v54 = vld [vmem:[%s245_s4] ss:$0 sm:$0xff] }
   0x7   :  { %32 = vmax.xlane.f32.xlu0 %v31_v8 }
   0xb   :  { %37 = vmax.xlane.f32.xlu0 %v36_v9 }
  0x94   :  { %v33_v11 = vpop.xlane.xlu0 %32 }
  0x95   :  { %v40_v12 = vmul.f32 %v39_v10, %v33_v11  ;;  %v174_v11 = vmov 839922192  }
  0x97   :  { %v43_v13 = vsel %vm42_vm1, %v40_v12, 0.0  ;;  %v138_v12 = vunpack.c.l.s4 %v174_v11 }
  0x98   :  { %v44_v14 = vrot.slane %v43_v13, 4  ;;  %v38_v15 = vpop.xlane.xlu0 %37 }
  0x99   :  { %v41_v16 = vmul.f32 %v39_v10, %v38_v15 }
  0x9a   :  { %v45_v17 = vadd.f32 %v44_v14, %v43_v13  ;;  %v139_v13 = vunpack.c.0.s8 %v138_v12 }
  0x9b   :  { %v50_v18 = vsel %vm42_vm1, %v41_v16, 0.0 }
  0x9c   :  { %v46_v19 = vrot.slane %v45_v17, 2  ;;  %v51_v20 = vrot.slane %v50_v18, 4  ;;  %v142_v14 = vsub.s32 %v139_v13, %v69_v26 }
  0x9e   :  { %v47_v22 = vadd.f32 %v46_v19, %v45_v17  ;;  %v52_v23 = vadd.f32 %v51_v20, %v50_v18 }
  0xa0   :  { %v53_v24 = vrot.slane %v52_v23, 2  ;;  %v48_v25 = vrot.slane %v47_v22, 1 }
  0xa2   :  { %v54_v28 = vadd.f32 %v53_v24, %v52_v23  ;;  %v49_v29 = vadd.f32 %v48_v25, %v47_v22 }
  0xa4   :  { %v55_v30 = vrot.slane %v54_v28, 1  ;;  %v64_v31 = vadd.f32 %v161_v27, %v49_v29 }
  0xa6   :  { %v66_v33 = vmax.f32 %v64_v31, 0.0  ;;  %v56_v34 = vadd.f32 %v55_v30, %v54_v28 }
  0xa8   :  { %v71_v35 = vrot.slane %v66_v33, %v70_v32  ;;  %v65_v36 = vadd.f32 %v161_v27, %v56_v34 }
  0xaa   :  { %73 = vbcast.lane.b32.xlu1 %v71_v35, 256  ;;  %v67_v37 = vmax.f32 %v65_v36, 0.0 }
  0xac   :  { %v78_v38 = vrot.slane %v67_v37, %v70_v32 }
  0xae   :  { %80 = vbcast.lane.b32.xlu1 %v78_v38, 256 }
 0x11c   :  { %v74_v40 = vpop.permute.xlu1 %73 }
 0x11d   :  { %v83_v41 = vmul.f32 %v82_v39, %v74_v40 }
 0x11f   :  { %v86_v42 = vsel %vm85_vm2, %v83_v41, 0.0 }
 0x120   :  { %v87_v43 = vrot.slane %v86_v42, 4  ;;  %v81_v44 = vpop.permute.xlu1 %80 }
 0x121   :  { %v84_v45 = vmul.f32 %v82_v39, %v81_v44 }
 0x122   :  { %v88_v46 = vadd.f32 %v87_v43, %v86_v42 }
 0x123   :  { %v93_v47 = vsel %vm85_vm2, %v84_v45, 0.0 }
 0x124   :  { %v89_v48 = vrot.slane %v88_v46, 2  ;;  %v94_v49 = vrot.slane %v93_v47, 4 }
 0x126   :  { %v90_v50 = vadd.f32 %v89_v48, %v88_v46  ;;  %v95_v51 = vadd.f32 %v94_v49, %v93_v47 }
 0x128   :  { %v91_v52 = vrot.slane %v90_v50, 1  ;;  %v96_v53 = vrot.slane %v95_v51, 2 }
 0x12a   :  { %v92_v55 = vadd.f32 %v91_v52, %v90_v50  ;;  %v97_v56 = vadd.f32 %v96_v53, %v95_v51 }
 0x12c   :  { %v107_v57 = vadd.f32 %v162_v54, %v92_v55  ;;  %v98_v58 = vrot.slane %v97_v56, 1 }
 0x12e   :  { %v109_v59 = vsub.f32 0.0, %v107_v57  ;;  %v99_v60 = vadd.f32 %v98_v58, %v97_v56 }
 0x130   :  { %v111_v61 = vmul.f32 1.442695, %v109_v59  ;;  %v108_v62 = vadd.f32 %v162_v54, %v99_v60 }
 0x132   :  { %166 = vpow2.f32 %v111_v61  ;;  %v110_v63 = vsub.f32 0.0, %v108_v62 }
 0x134   :  { %v113_v2 = vmul.f32 1.442695, %v110_v63 }
 0x136   :  { %168 = vpow2.f32 %v113_v2 }
 0x13c   :  { %v167_v3 = vpop.eup %166 }
 0x13d   :  { %v115_v4 = vadd.f32 1.0, %v167_v3 }
 0x13f   :  { %170 = vrcp.f32 %v115_v4 }
 0x140   :  { %v169_v5 = vpop.eup %168 }
 0x141   :  { %v116_v6 = vadd.f32 1.0, %v169_v5 }
 0x143   :  { %172 = vrcp.f32 %v116_v6 }
 0x149   :  { %v171_v7 = vpop.eup %170 }
 0x14a   :  { %v124_v8 = vrot.slane %v171_v7, %v70_v32 }
 0x14c   :  { %126 = vbcast.lane.b32.xlu0 %v124_v8, 256 }
 0x14d   :  { %v173_v9 = vpop.eup %172 }
 0x14e   :  { %v131_v10 = vrot.slane %v173_v9, %v70_v32 }
 0x150   :  { %133 = vbcast.lane.b32.xlu1 %v131_v10, 256 }
 0x1be   :  { %v127_v15 = vpop.permute.xlu0 %126 }
 0x1bf   :  { %v143_v16 = vrot.slane %v127_v15, %v142_v14 }
 0x1c1   :  { %v153_v17 = vmul.f32 %v143_v16, %v208_v0 }
 0x1c2   :  { %v134_v18 = vpop.permute.xlu1 %133 }
 0x1c3   :  { %155 = vst [vmem:[%s246_s5] sm:$0xff] %v153_v17  ;;  %v150_v19 = vrot.slane %v134_v18, %v142_v14 }
 0x1c5   :  { %v154_v20 = vmul.f32 %v150_v19, %v213_v1 }
 0x1c7   :  { %156 = vst [vmem:[%s246_s5 + $0x8] sm:$0xff] %v154_v20 }

// kernel: cbam2_forward.15
= control target key start
LH: loop header
LB: loop body
LE: loop exit
PB: predicated region body
PF: predicated region fallthrough
CT: control target
= control target key end

     0   :  { %s517_s12 = smov 0   ;;  %s679_s0 = inlined_call_operand.vmem [shape: f32[512,128], index: 0, kind: input, shape index: {}]   ;;  %s680_s1 = inlined_call_operand.vmem [shape: f32[1,128], index: 1, kind: input, shape index: {}]   ;;  %s681_s2 = inlined_call_operand.vmem [shape: f32[1,128], index: 2, kind: input, shape index: {}]   ;;  %s682_s3 = inlined_call_operand.vmem [shape: f32[512,128], index: 3, kind: output, shape index: {}]  }
   0x1 LB: > { %s468_s13 = sadd.s32 4294967295, %s495_s12   ;;  %p472_p0 = scmp.ge.s32.totalorder %s495_s12, 1  ;;  %s495_s12 = sphi %s517_s12, %s13_s12  }
   0x2   : > { %p138_p1 = scmp.lt.s32.totalorder %s495_s12, 3 }
   0x4   : > { %p139_p2 = pnand %p472_p0, %p138_p1 }
   0x5   : > { %s473_s14 = sshll.u32 (!%p139_p2), %s468_s13, 5  ;;  %v531_v0 = vld [vmem:[%s680_s1] ss:$0 sm:$0xff] (!%p139_p2) }
   0x6   : > { %142 = sbr.rel (%p139_p2) target bundleno = 62 (0x3e), region = 32  ;;  %p163_p3 = scmp.lt.s32.totalorder (!%p139_p2), %s473_s14, 63  ;;  %v541_v1 = vld [vmem:[%s681_s2] ss:$0 sm:$0xff] (!%p139_p2) }
   0xd   : > { %s684_s14 = smov (!%p163_p3, %s473_s14), 63 }
   0xe   : > { %s474_s15 = sshll.u32 %s684_s14, 3 }
   0xf   : > { %s536_s20 = scalar_lea.vmem %s679_s0, %s474_s15  ;;  %s569_s25 = scalar_lea.vmem %s682_s3, %s474_s15 }
  0x10   : > { %v174_v2 = vld [vmem:[%s536_s20] sm:$0xff]  ;;  %v175_v3 = vld [vmem:[%s536_s20 + $0x8] sm:$0xff]  ;;  %v176_v4 = vld [vmem:[%s536_s20 + $0x10] sm:$0xff] }
  0x11   : > { %v213_v5 = vmul.f32 %v531_v0, %v174_v2  ;;  %v214_v6 = vmul.f32 %v531_v0, %v175_v3  ;;  %v215_v7 = vmul.f32 %v531_v0, %v176_v4  ;;  %v177_v8 = vld [vmem:[%s536_s20 + $0x18] sm:$0xff]  ;;  %v178_v9 = vld [vmem:[%s536_s20 + $0x20] sm:$0xff]  ;;  %v179_v10 = vld [vmem:[%s536_s20 + $0x28] sm:$0xff] }
  0x12   : > { %v216_v11 = vmul.f32 %v531_v0, %v177_v8  ;;  %v217_v12 = vmul.f32 %v531_v0, %v178_v9  ;;  %v218_v13 = vmul.f32 %v531_v0, %v179_v10  ;;  %v180_v14 = vld [vmem:[%s536_s20 + $0x30] sm:$0xff]  ;;  %v181_v15 = vld [vmem:[%s536_s20 + $0x38] sm:$0xff]  ;;  %v182_v24 = vld [vmem:[%s536_s20 + $0x40] sm:$0xff] }
  0x13   : > { %v252_v16 = vadd.f32 %v541_v1, %v213_v5  ;;  %v253_v17 = vadd.f32 %v541_v1, %v214_v6  ;;  %v254_v18 = vadd.f32 %v541_v1, %v215_v7  ;;  %v219_v19 = vmul.f32 %v531_v0, %v180_v14  ;;  %v183_v32 = vld [vmem:[%s536_s20 + $0x48] sm:$0xff]  ;;  %v184_v33 = vld [vmem:[%s536_s20 + $0x50] sm:$0xff]  ;;  %v185_v34 = vld [vmem:[%s536_s20 + $0x58] sm:$0xff] }
  0x14   : > { %v255_v20 = vadd.f32 %v541_v1, %v216_v11  ;;  %v256_v21 = vadd.f32 %v541_v1, %v217_v12  ;;  %v257_v22 = vadd.f32 %v541_v1, %v218_v13  ;;  %v220_v23 = vmul.f32 %v531_v0, %v181_v15  ;;  %v186_v46 = vld [vmem:[%s536_s20 + $0x60] sm:$0xff]  ;;  %v187_v47 = vld [vmem:[%s536_s20 + $0x68] sm:$0xff]  ;;  %v188_v58 = vld [vmem:[%s536_s20 + $0x70] sm:$0xff] }
  0x15   : > { %vm284_vm0 = vcmp.gt.f32.partialorder %v252_v16, 0.0  ;;  %v316_v25 = vmul.f32 0.02, %v252_v16  ;;  %vm285_vm1 = vcmp.gt.f32.partialorder %v253_v17, 0.0  ;;  %v317_v26 = vmul.f32 0.02, %v253_v17 }
  0x16   : > { %vm286_vm2 = vcmp.gt.f32.partialorder %v254_v18, 0.0  ;;  %v318_v27 = vmul.f32 0.02, %v254_v18  ;;  %vm287_vm3 = vcmp.gt.f32.partialorder %v255_v20, 0.0  ;;  %v319_v28 = vmul.f32 0.02, %v255_v20 }
  0x17   : > { %v348_v29 = vsel %vm284_vm0, %v252_v16, %v316_v25  ;;  %v349_v30 = vsel %vm285_vm1, %v253_v17, %v317_v26  ;;  %vm288_vm4 = vcmp.gt.f32.partialorder %v256_v21, 0.0  ;;  %v320_v31 = vmul.f32 0.02, %v256_v21  ;;  %v189_v59 = vld [vmem:[%s536_s20 + $0x78] sm:$0xff]  ;;  %v190_v6 = vld [vmem:[%s536_s20 + $0x80] sm:$0xff]  ;;  %v191_v7 = vld [vmem:[%s536_s20 + $0x88] sm:$0xff] }
  0x18   : > { %380 = vst [vmem:[%s569_s25] sm:$0xff] %v348_v29  ;;  %381 = vst [vmem:[%s569_s25 + $0x8] sm:$0xff] %v349_v30  ;;  %v350_v35 = vsel %vm286_vm2, %v254_v18, %v318_v27  ;;  %v351_v36 = vsel %vm287_vm3, %v255_v20, %v319_v28  ;;  %vm289_vm5 = vcmp.gt.f32.partialorder %v257_v22, 0.0  ;;  %v321_v37 = vmul.f32 0.02, %v257_v22  ;;  %v192_v12 = vld [vmem:[%s536_s20 + $0x90] sm:$0xff]  ;;  %v193_v13 = vld [vmem:[%s536_s20 + $0x98] sm:$0xff] }
  0x19   : > { %382 = vst [vmem:[%s569_s25 + $0x10] sm:$0xff] %v350_v35  ;;  %383 = vst [vmem:[%s569_s25 + $0x18] sm:$0xff] %v351_v36  ;;  %v352_v38 = vsel %vm288_vm4, %v256_v21, %v320_v31  ;;  %v258_v39 = vadd.f32 %v541_v1, %v219_v19  ;;  %v259_v40 = vadd.f32 %v541_v1, %v220_v23  ;;  %v195_v25 = vld [vmem:[%s536_s20 + $0xa8] sm:$0xff]  ;;  %v196_v36 = vld [vmem:[%s536_s20 + $0xb0] sm:$0xff] }
  0x1a   : > { %v221_v41 = vmul.f32 %v531_v0, %v182_v24  ;;  %384 = vst [vmem:[%s569_s25 + $0x20] sm:$0xff] %v352_v38  ;;  %v353_v42 = vsel %vm289_vm5, %v257_v22, %v321_v37  ;;  %v222_v43 = vmul.f32 %v531_v0, %v183_v32  ;;  %v223_v44 = vmul.f32 %v531_v0, %v184_v33  ;;  %v194_v24 = vld [vmem:[%s536_s20 + $0xa0] sm:$0xff]  ;;  %v197_v37 = vld [vmem:[%s536_s20 + $0xb8] sm:$0xff] }
  0x1b   : > { %v224_v45 = vmul.f32 %v531_v0, %v185_v34  ;;  %385 = vst [vmem:[%s569_s25 + $0x28] sm:$0xff] %v353_v42  ;;  %vm290_vm6 = vcmp.gt.f32.partialorder %v258_v39, 0.0  ;;  %v322_v48 = vmul.f32 0.02, %v258_v39  ;;  %vm291_vm7 = vcmp.gt.f32.partialorder %v259_v40, 0.0 }
  0x1c   : > { %v323_v49 = vmul.f32 0.02, %v259_v40  ;;  %v260_v50 = vadd.f32 %v541_v1, %v221_v41  ;;  %v261_v51 = vadd.f32 %v541_v1, %v222_v43  ;;  %v262_v52 = vadd.f32 %v541_v1, %v223_v44 }
  0x1d   : > { %v263_v53 = vadd.f32 %v541_v1, %v224_v45  ;;  %v354_v54 = vsel %vm290_vm6, %v258_v39, %v322_v48  ;;  %v225_v56 = vmul.f32 %v531_v0, %v186_v46  ;;  %v226_v57 = vmul.f32 %v531_v0, %v187_v47  ;;  %v198_v46 = vld [vmem:[%s536_s20 + $0xc0] sm:$0xff]  ;;  %v199_v47 = vld [vmem:[%s536_s20 + $0xc8] sm:$0xff] }
  0x1e   : > { %v355_v55 = vsel %vm291_vm7, %v259_v40, %v323_v49  ;;  %386 = vst [vmem:[%s569_s25 + $0x30] sm:$0xff] %v354_v54  ;;  %vm292_vm8 = vcmp.gt.f32.partialorder %v260_v50, 0.0  ;;  %v324_v60 = vmul.f32 0.02, %v260_v50  ;;  %vm293_vm9 = vcmp.gt.f32.partialorder %v261_v51, 0.0 }
  0x1f   : > { %387 = vst [vmem:[%s569_s25 + $0x38] sm:$0xff] %v355_v55  ;;  %v325_v61 = vmul.f32 0.02, %v261_v51  ;;  %vm294_vm10 = vcmp.gt.f32.partialorder %v262_v52, 0.0  ;;  %v326_v62 = vmul.f32 0.02, %v262_v52  ;;  %v264_v4 = vadd.f32 %v541_v1, %v225_v56 }
  0x20   : > { %vm295_vm11 = vcmp.gt.f32.partialorder %v263_v53, 0.0  ;;  %v327_v63 = vmul.f32 0.02, %v263_v53  ;;  %v356_v2 = vsel %vm292_vm8, %v260_v50, %v324_v60  ;;  %v265_v5 = vadd.f32 %v541_v1, %v226_v57 }
  0x21   : > { %v357_v3 = vsel %vm293_vm9, %v261_v51, %v325_v61  ;;  %388 = vst [vmem:[%s569_s25 + $0x40] sm:$0xff] %v356_v2  ;;  %v358_v8 = vsel %vm294_vm10, %v262_v52, %v326_v62  ;;  %v227_v10 = vmul.f32 %v531_v0, %v188_v58  ;;  %v228_v11 = vmul.f32 %v531_v0, %v189_v59  ;;  %v200_v52 = vld [vmem:[%s536_s20 + $0xd0] sm:$0xff]  ;;  %v202_v2 = vld [vmem:[%s536_s20 + $0xe0] sm:$0xff] }
  0x22   : > { %389 = vst [vmem:[%s569_s25 + $0x48] sm:$0xff] %v357_v3  ;;  %v359_v9 = vsel %vm295_vm11, %v263_v53, %v327_v63  ;;  %390 = vst [vmem:[%s569_s25 + $0x50] sm:$0xff] %v358_v8  ;;  %vm296_vm12 = vcmp.gt.f32.partialorder %v264_v4, 0.0  ;;  %v328_v14 = vmul.f32 0.02, %v264_v4  ;;  %vm297_vm13 = vcmp.gt.f32.partialorder %v265_v5, 0.0 }
  0x23   : > { %391 = vst [vmem:[%s569_s25 + $0x58] sm:$0xff] %v359_v9  ;;  %v329_v15 = vmul.f32 0.02, %v265_v5  ;;  %v266_v16 = vadd.f32 %v541_v1, %v227_v10  ;;  %v267_v17 = vadd.f32 %v541_v1, %v228_v11  ;;  %v229_v18 = vmul.f32 %v531_v0, %v190_v6  ;;  %v201_v53 = vld [vmem:[%s536_s20 + $0xd8] sm:$0xff]  ;;  %v203_v3 = vld [vmem:[%s536_s20 + $0xe8] sm:$0xff] }
  0x24   : > { %v230_v19 = vmul.f32 %v531_v0, %v191_v7  ;;  %v360_v20 = vsel %vm296_vm12, %v264_v4, %v328_v14  ;;  %v231_v22 = vmul.f32 %v531_v0, %v192_v12  ;;  %v232_v23 = vmul.f32 %v531_v0, %v193_v13  ;;  %v204_v14 = vld [vmem:[%s536_s20 + $0xf0] sm:$0xff] }
  0x25   : > { %v361_v21 = vsel %vm297_vm13, %v265_v5, %v329_v15  ;;  %392 = vst [vmem:[%s569_s25 + $0x60] sm:$0xff] %v360_v20  ;;  %vm298_vm14 = vcmp.gt.f32.partialorder %v266_v16, 0.0  ;;  %v330_v26 = vmul.f32 0.02, %v266_v16  ;;  %vm299_vm15 = vcmp.gt.f32.partialorder %v267_v17, 0.0  ;;  %v205_v15 = vld [vmem:[%s536_s20 + $0xf8] sm:$0xff] }
  0x26   : > { %393 = vst [vmem:[%s569_s25 + $0x68] sm:$0xff] %v361_v21  ;;  %v331_v27 = vmul.f32 0.02, %v267_v17  ;;  %v268_v28 = vadd.f32 %v541_v1, %v229_v18  ;;  %v269_v29 = vadd.f32 %v541_v1, %v230_v19  ;;  %v270_v30 = vadd.f32 %v541_v1, %v231_v22 }
  0x27   : > { %v271_v31 = vadd.f32 %v541_v1, %v232_v23  ;;  %v362_v32 = vsel %vm298_vm14, %v266_v16, %v330_v26  ;;  %v233_v34 = vmul.f32 %v531_v0, %v194_v24  ;;  %v234_v35 = vmul.f32 %v531_v0, %v195_v25 }
  0x28   : > { %v363_v33 = vsel %vm299_vm15, %v267_v17, %v331_v27  ;;  %394 = vst [vmem:[%s569_s25 + $0x70] sm:$0xff] %v362_v32  ;;  %vm300_vm0 = vcmp.gt.f32.partialorder %v268_v28, 0.0  ;;  %v332_v38 = vmul.f32 0.02, %v268_v28  ;;  %vm301_vm1 = vcmp.gt.f32.partialorder %v269_v29, 0.0 }
  0x29   : > { %395 = vst [vmem:[%s569_s25 + $0x78] sm:$0xff] %v363_v33  ;;  %v333_v39 = vmul.f32 0.02, %v269_v29  ;;  %vm302_vm2 = vcmp.gt.f32.partialorder %v270_v30, 0.0  ;;  %v334_v40 = vmul.f32 0.02, %v270_v30  ;;  %v272_v44 = vadd.f32 %v541_v1, %v233_v34 }
  0x2a   : > { %vm303_vm3 = vcmp.gt.f32.partialorder %v271_v31, 0.0  ;;  %v335_v41 = vmul.f32 0.02, %v271_v31  ;;  %v364_v42 = vsel %vm300_vm0, %v268_v28, %v332_v38  ;;  %v273_v45 = vadd.f32 %v541_v1, %v234_v35 }
  0x2b   : > { %v365_v43 = vsel %vm301_vm1, %v269_v29, %v333_v39  ;;  %396 = vst [vmem:[%s569_s25 + $0x80] sm:$0xff] %v364_v42  ;;  %v366_v48 = vsel %vm302_vm2, %v270_v30, %v334_v40  ;;  %v235_v50 = vmul.f32 %v531_v0, %v196_v36  ;;  %v236_v51 = vmul.f32 %v531_v0, %v197_v37 }
  0x2c   : > { %397 = vst [vmem:[%s569_s25 + $0x88] sm:$0xff] %v365_v43  ;;  %v367_v49 = vsel %vm303_vm3, %v271_v31, %v335_v41  ;;  %398 = vst [vmem:[%s569_s25 + $0x90] sm:$0xff] %v366_v48  ;;  %vm304_vm4 = vcmp.gt.f32.partialorder %v272_v44, 0.0  ;;  %v336_v54 = vmul.f32 0.02, %v272_v44  ;;  %vm305_vm5 = vcmp.gt.f32.partialorder %v273_v45, 0.0 }
  0x2d   : > { %399 = vst [vmem:[%s569_s25 + $0x98] sm:$0xff] %v367_v49  ;;  %v337_v55 = vmul.f32 0.02, %v273_v45  ;;  %v274_v56 = vadd.f32 %v541_v1, %v235_v50  ;;  %v275_v57 = vadd.f32 %v541_v1, %v236_v51  ;;  %v237_v58 = vmul.f32 %v531_v0, %v198_v46 }
  0x2e   : > { %v238_v59 = vmul.f32 %v531_v0, %v199_v47  ;;  %v368_v60 = vsel %vm304_vm4, %v272_v44, %v336_v54  ;;  %v239_v62 = vmul.f32 %v531_v0, %v200_v52  ;;  %v240_v63 = vmul.f32 %v531_v0, %v201_v53 }
  0x2f   : > { %v369_v61 = vsel %vm305_vm5, %v273_v45, %v337_v55  ;;  %400 = vst [vmem:[%s569_s25 + $0xa0] sm:$0xff] %v368_v60  ;;  %vm306_vm6 = vcmp.gt.f32.partialorder %v274_v56, 0.0  ;;  %v338_v4 = vmul.f32 0.02, %v274_v56  ;;  %vm307_vm7 = vcmp.gt.f32.partialorder %v275_v57, 0.0 }
  0x30   : > { %401 = vst [vmem:[%s569_s25 + $0xa8] sm:$0xff] %v369_v61  ;;  %v339_v5 = vmul.f32 0.02, %v275_v57  ;;  %v276_v6 = vadd.f32 %v541_v1, %v237_v58  ;;  %v277_v7 = vadd.f32 %v541_v1, %v238_v59  ;;  %v278_v8 = vadd.f32 %v541_v1, %v239_v62 }
  0x31   : > { %v279_v9 = vadd.f32 %v541_v1, %v240_v63  ;;  %v370_v10 = vsel %vm306_vm6, %v274_v56, %v338_v4  ;;  %v241_v12 = vmul.f32 %v531_v0, %v202_v2  ;;  %v242_v13 = vmul.f32 %v531_v0, %v203_v3 }
  0x32   : > { %v371_v11 = vsel %vm307_vm7, %v275_v57, %v339_v5  ;;  %402 = vst [vmem:[%s569_s25 + $0xb0] sm:$0xff] %v370_v10  ;;  %vm308_vm8 = vcmp.gt.f32.partialorder %v276_v6, 0.0  ;;  %v340_v16 = vmul.f32 0.02, %v276_v6  ;;  %vm309_vm9 = vcmp.gt.f32.partialorder %v277_v7, 0.0 }
  0x33   : > { %403 = vst [vmem:[%s569_s25 + $0xb8] sm:$0xff] %v371_v11  ;;  %v341_v17 = vmul.f32 0.02, %v277_v7  ;;  %vm310_vm10 = vcmp.gt.f32.partialorder %v278_v8, 0.0  ;;  %v342_v18 = vmul.f32 0.02, %v278_v8  ;;  %v280_v22 = vadd.f32 %v541_v1, %v241_v12 }
  0x34   : > { %vm311_vm11 = vcmp.gt.f32.partialorder %v279_v9, 0.0  ;;  %v343_v19 = vmul.f32 0.02, %v279_v9  ;;  %v372_v20 = vsel %vm308_vm8, %v276_v6, %v340_v16  ;;  %v281_v23 = vadd.f32 %v541_v1, %v242_v13 }
  0x35   : > { %v373_v21 = vsel %vm309_vm9, %v277_v7, %v341_v17  ;;  %404 = vst [vmem:[%s569_s25 + $0xc0] sm:$0xff] %v372_v20  ;;  %v374_v24 = vsel %vm310_vm10, %v278_v8, %v342_v18  ;;  %v243_v26 = vmul.f32 %v531_v0, %v204_v14  ;;  %v244_v27 = vmul.f32 %v531_v0, %v205_v15 }
  0x36   : > { %405 = vst [vmem:[%s569_s25 + $0xc8] sm:$0xff] %v373_v21  ;;  %v375_v25 = vsel %vm311_vm11, %v279_v9, %v343_v19  ;;  %406 = vst [vmem:[%s569_s25 + $0xd0] sm:$0xff] %v374_v24  ;;  %vm312_vm12 = vcmp.gt.f32.partialorder %v280_v22, 0.0  ;;  %v344_v28 = vmul.f32 0.02, %v280_v22  ;;  %vm313_vm13 = vcmp.gt.f32.partialorder %v281_v23, 0.0 }
  0x37   : > { %407 = vst [vmem:[%s569_s25 + $0xd8] sm:$0xff] %v375_v25  ;;  %v345_v29 = vmul.f32 0.02, %v281_v23  ;;  %v282_v30 = vadd.f32 %v541_v1, %v243_v26  ;;  %v283_v31 = vadd.f32 %v541_v1, %v244_v27 }
  0x38   : > { %v376_v32 = vsel %vm312_vm12, %v280_v22, %v344_v28 }
  0x39   : > { %v377_v33 = vsel %vm313_vm13, %v281_v23, %v345_v29  ;;  %408 = vst [vmem:[%s569_s25 + $0xe0] sm:$0xff] %v376_v32  ;;  %vm314_vm14 = vcmp.gt.f32.partialorder %v282_v30, 0.0  ;;  %v346_v34 = vmul.f32 0.02, %v282_v30  ;;  %vm315_vm15 = vcmp.gt.f32.partialorder %v283_v31, 0.0 }
  0x3a   : > { %409 = vst [vmem:[%s569_s25 + $0xe8] sm:$0xff] %v377_v33  ;;  %v347_v0 = vmul.f32 0.02, %v283_v31 }
  0x3b   : > { %v378_v35 = vsel %vm314_vm14, %v282_v30, %v346_v34 }
  0x3c   : > { %v379_v36 = vsel %vm315_vm15, %v283_v31, %v347_v0  ;;  %410 = vst [vmem:[%s569_s25 + $0xf0] sm:$0xff] %v378_v35 }
  0x3d   : > { %411 = vst [vmem:[%s569_s25 + $0xf8] sm:$0xff] %v379_v36 }
  0x3e PF: > { %s13_s12 = sadd.s32 1, %s495_s12  }
  0x3f   : > { %p10_p4 = scmp.ge.s32.totalorder %s13_s12, 4  }
  0x41   :  { %12 = sbr.rel (!%p10_p4) target bundleno = 1 (0x1), region = 62 }

// kernel: cbam2_forward.14
= control target key start
LH: loop header
LB: loop body
LE: loop exit
PB: predicated region body
PF: predicated region fallthrough
CT: control target
= control target key end

     0   :  { %s955_s12 = smov 0   ;;  %s1138_s0 = inlined_call_operand.vmem [shape: bf16[512,128], index: 0, kind: input, shape index: {}]   ;;  %s1139_s1 = inlined_call_operand.vmem [shape: bf16[128,128], index: 1, kind: input, shape index: {}]   ;;  %s1140_s2 = inlined_call_operand.vmem [shape: f32[512,128], index: 2, kind: output, shape index: {0}]   ;;  %s1141_s3 = inlined_call_operand.vmem [shape: f32[16,128], index: 3, kind: output, shape index: {1}]  }
   0x1 LB: > { %s961_s13 = sadd.s32 4294967295, %s933_s12   ;;  %p775_p0 = scmp.ge.s32.totalorder %s933_s12, 1  ;;  %s933_s12 = sphi %s955_s12, %s14_s12  }
   0x2   : > { %p141_p1 = scmp.lt.s32.totalorder %s933_s12, 3 }
   0x4   : > { %p142_p2 = pnand %p775_p0, %p141_p1 }
   0x5   : > { %v903_v0 = vld [vmem:[%s1139_s1] sm:$0xff] (!%p142_p2)   ;;  %s776_s16 = sshll.u32 (!%p142_p2), %s961_s13, 5  ;;  %v904_v1 = vld [vmem:[%s1139_s1 + $0x8] sm:$0xff] (!%p142_p2)   ;;  %v905_v2 = vld [vmem:[%s1139_s1 + $0x10] sm:$0xff] (!%p142_p2)   ;;  %p181_p4 = scmp.lt.s32.totalorder (!%p142_p2), %s961_s13, 1 }
   0x6   : > { %145 = sbr.rel (%p142_p2) target bundleno = 332 (0x14c), region = 28  ;;  %p170_p3 = scmp.lt.s32.totalorder (!%p142_p2), %s776_s16, 63  ;;  %831 = vmatprep.subr.bf16.mxu0 (!%p142_p2), %v903_v0  ;;  %879 = vmatprep.subr.bf16.mxu1 (!%p142_p2), %v903_v0  ;;  %v906_v3 = vld [vmem:[%s1139_s1 + $0x18] sm:$0xff] (!%p142_p2)   ;;  %v907_v5 = vld [vmem:[%s1139_s1 + $0x20] sm:$0xff] (!%p142_p2)   ;;  %v908_v6 = vld [vmem:[%s1139_s1 + $0x28] sm:$0xff] (!%p142_p2)  }
   0x7   : > { %832 = vmatpush3.bf16.msra.mxu0 (!%p142_p2), %v903_v0  ;;  %887 = vmatpush3.bf16.msra.mxu1 (!%p142_p2), %v903_v0  ;;  %v909_v8 = vld [vmem:[%s1139_s1 + $0x30] sm:$0xff] (!%p142_p2)   ;;  %v910_v9 = vld [vmem:[%s1139_s1 + $0x38] sm:$0xff] (!%p142_p2)  }
   0x8   : > { %833 = vmatprep.subr.bf16.mxu0 (!%p142_p2), %v904_v1  ;;  %880 = vmatprep.subr.bf16.mxu1 (!%p142_p2), %v904_v1 }
   0xb   : > { %834 = vmatpush3.bf16.msra.mxu0 (!%p142_p2), %v904_v1  ;;  %888 = vmatpush3.bf16.msra.mxu1 (!%p142_p2), %v904_v1 }
   0xc   : > { %835 = vmatprep.subr.bf16.mxu0 (!%p142_p2), %v905_v2  ;;  %881 = vmatprep.subr.bf16.mxu1 (!%p142_p2), %v905_v2 }
   0xd   : > { %s1143_s16 = smov (!%p170_p3, %s776_s16), 63  ;;  %s1145_s13 = smov (!%p181_p4, %s961_s13), 1 }
   0xe   : > { %s777_s21 = sshll.u32 %s1143_s16, 2  ;;  %s779_s8 = sshll.u32 %s1143_s16, 3 }
   0xf   : > { %s981_s24 = scalar_lea.vmem %s1138_s0, %s777_s21  ;;  %836 = vmatpush3.bf16.msra.mxu0 %v905_v2  ;;  %889 = vmatpush3.bf16.msra.mxu1 %v905_v2  ;;  %s1018_s11 = scalar_lea.vmem %s1140_s2, %s779_s8 }
  0x10   : > { %v911_v4 = vld [vmem:[%s981_s24] sm:$0xff]   ;;  %837 = vmatprep.subr.bf16.mxu0 %v906_v3  ;;  %882 = vmatprep.subr.bf16.mxu1 %v906_v3  ;;  %v912_v10 = vld [vmem:[%s981_s24 + $0x8] sm:$0xff]   ;;  %v913_v12 = vld [vmem:[%s981_s24 + $0x10] sm:$0xff]   ;;  %s780_s14 = sshll.u32 %s1145_s13, 3 }
  0x11   : > { %847 = vmatprep.mubr.bf16.mxu0 %v911_v4  ;;  %v919_v7 = vld [vmem:[%s981_s24 + $0x40] sm:$0xff]   ;;  %v920_v11 = vld [vmem:[%s981_s24 + $0x48] sm:$0xff]   ;;  %v921_v13 = vld [vmem:[%s981_s24 + $0x50] sm:$0xff]   ;;  %s184_s17 = scalar_lea.vmem %s1141_s3, %s780_s14 }
  0x12   : > { %863 = vmatprep.mubr.bf16.mxu1 %v919_v7  ;;  %v914_v14 = vld [vmem:[%s981_s24 + $0x18] sm:$0xff]   ;;  %v915_v16 = vld [vmem:[%s981_s24 + $0x20] sm:$0xff]   ;;  %v916_v18 = vld [vmem:[%s981_s24 + $0x28] sm:$0xff]  }
  0x13   : > { %838 = vmatpush3.bf16.msra.mxu0 %v906_v3  ;;  %890 = vmatpush3.bf16.msra.mxu1 %v906_v3  ;;  %v922_v15 = vld [vmem:[%s981_s24 + $0x58] sm:$0xff]   ;;  %v923_v17 = vld [vmem:[%s981_s24 + $0x60] sm:$0xff]   ;;  %v924_v19 = vld [vmem:[%s981_s24 + $0x68] sm:$0xff]  }
  0x14   : > { %839 = vmatprep.subr.bf16.mxu0 %v907_v5  ;;  %883 = vmatprep.subr.bf16.mxu1 %v907_v5  ;;  %v917_v20 = vld [vmem:[%s981_s24 + $0x30] sm:$0xff]   ;;  %v918_v22 = vld [vmem:[%s981_s24 + $0x38] sm:$0xff]  }
  0x15   : > { %v925_v21 = vld [vmem:[%s981_s24 + $0x70] sm:$0xff]   ;;  %v926_v23 = vld [vmem:[%s981_s24 + $0x78] sm:$0xff]  }
  0x17   : > { %840 = vmatpush3.bf16.msra.mxu0 %v907_v5  ;;  %891 = vmatpush3.bf16.msra.mxu1 %v907_v5 }
  0x18   : > { %841 = vmatprep.subr.bf16.mxu0 %v908_v6  ;;  %884 = vmatprep.subr.bf16.mxu1 %v908_v6 }
  0x1b   : > { %842 = vmatpush3.bf16.msra.mxu0 %v908_v6  ;;  %892 = vmatpush3.bf16.msra.mxu1 %v908_v6 }
  0x1c   : > { %843 = vmatprep.subr.bf16.mxu0 %v909_v8  ;;  %885 = vmatprep.subr.bf16.mxu1 %v909_v8 }
  0x1f   : > { %844 = vmatpush3.bf16.msra.mxu0 %v909_v8  ;;  %893 = vmatpush3.bf16.msra.mxu1 %v909_v8 }
  0x20   : > { %845 = vmatprep.subr.bf16.mxu0 %v910_v9  ;;  %886 = vmatprep.subr.bf16.mxu1 %v910_v9 }
  0x23   : > { %846 = vmatpush3.bf16.msra.mxu0 %v910_v9  ;;  %894 = vmatpush3.bf16.msra.mxu1 %v910_v9 }
  0x26   : > { %848 = vmatmul.mubr.bf16.vlgmr.msra.gmra.mrb[0].mxu0 %v912_v10  ;;  %864 = vmatmul.mubr.bf16.vlgmr.msra.gmra.mrb[0].mxu1 %v920_v11 }
  0x27   : > { %851 = vmatprep.mubr.bf16.mxu0 %v913_v12  ;;  %867 = vmatprep.mubr.bf16.mxu1 %v921_v13 }
  0x2e   : > { %852 = vmatmul.mubr.bf16.gmra.mrb[4].mxu0 %v914_v14  ;;  %868 = vmatmul.mubr.bf16.gmra.mrb[4].mxu1 %v922_v15 }
  0x2f   : > { %855 = vmatprep.mubr.bf16.mxu0 %v915_v16  ;;  %871 = vmatprep.mubr.bf16.mxu1 %v923_v17 }
  0x36   : > { %856 = vmatmul.mubr.bf16.gmra.mrb[8].mxu0 %v916_v18  ;;  %872 = vmatmul.mubr.bf16.gmra.mrb[8].mxu1 %v924_v19 }
  0x37   : > { %859 = vmatprep.mubr.bf16.mxu0 %v917_v20  ;;  %875 = vmatprep.mubr.bf16.mxu1 %v925_v21 }
  0x3e   : > { %860 = vmatmul.mubr.bf16.gmra.mrb[12].mxu0 %v918_v22  ;;  %876 = vmatmul.mubr.bf16.gmra.mrb[12].mxu1 %v926_v23 }
  0xf9   : > { %v849_v24 = vpop.f32.mrb[0].mxu0  ;;  %v1020_v25 = vpop.f32.mrb[0].mxu1 }
  0xfa   : > { %541 = vst [vmem:[%s1018_s11 + $0x10] sm:$0xff] %v849_v24  ;;  %v412_v26 = vpop.f32.mrb[1].mxu0  ;;  %557 = vst [vmem:[%s1018_s11 + $0x90] sm:$0xff] %v1020_v25  ;;  %v1025_v27 = vpop.f32.mrb[1].mxu1  ;;  %v610_v35 = vmul.f32 %v849_v24, %v849_v24 }
  0xfb   : > { %539 = vst [vmem:[%s1018_s11] sm:$0xff] %v412_v26  ;;  %v850_v28 = vpop.f32.mrb[2].mxu0  ;;  %555 = vst [vmem:[%s1018_s11 + $0x80] sm:$0xff] %v1025_v27  ;;  %v1030_v29 = vpop.f32.mrb[2].mxu1  ;;  %v608_v32 = vmul.f32 %v412_v26, %v412_v26 }
  0xfc   : > { %542 = vst [vmem:[%s1018_s11 + $0x18] sm:$0xff] %v850_v28  ;;  %v415_v30 = vpop.f32.mrb[3].mxu0  ;;  %558 = vst [vmem:[%s1018_s11 + $0x98] sm:$0xff] %v1030_v29  ;;  %v1035_v31 = vpop.f32.mrb[3].mxu1  ;;  %v611_v38 = vmul.f32 %v850_v28, %v850_v28 }
  0xfd   : > { %540 = vst [vmem:[%s1018_s11 + $0x8] sm:$0xff] %v415_v30  ;;  %v571_v33 = vadd.f32 %v415_v30, %v412_v26  ;;  %v609_v34 = vmul.f32 %v415_v30, %v415_v30  ;;  %556 = vst [vmem:[%s1018_s11 + $0x88] sm:$0xff] %v1035_v31 }
  0xff   : > { %v572_v36 = vadd.f32 %v849_v24, %v571_v33  ;;  %v640_v37 = vadd.f32 %v609_v34, %v608_v32 }
 0x101   : > { %v641_v39 = vadd.f32 %v640_v37, %v610_v35  ;;  %v853_v40 = vpop.f32.mrb[4].mxu0  ;;  %v573_v41 = vadd.f32 %v850_v28, %v572_v36  ;;  %v1040_v42 = vpop.f32.mrb[4].mxu1 }
 0x102   : > { %545 = vst [vmem:[%s1018_s11 + $0x30] sm:$0xff] %v853_v40  ;;  %v428_v43 = vpop.f32.mrb[5].mxu0  ;;  %561 = vst [vmem:[%s1018_s11 + $0xb0] sm:$0xff] %v1040_v42  ;;  %v1045_v44 = vpop.f32.mrb[5].mxu1  ;;  %v614_v55 = vmul.f32 %v853_v40, %v853_v40 }
 0x103   : > { %543 = vst [vmem:[%s1018_s11 + $0x20] sm:$0xff] %v428_v43  ;;  %v574_v45 = vadd.f32 %v573_v41, %v428_v43  ;;  %v612_v46 = vmul.f32 %v428_v43, %v428_v43  ;;  %v642_v47 = vadd.f32 %v641_v39, %v611_v38  ;;  %v854_v48 = vpop.f32.mrb[6].mxu0  ;;  %559 = vst [vmem:[%s1018_s11 + $0xa0] sm:$0xff] %v1045_v44  ;;  %v1050_v49 = vpop.f32.mrb[6].mxu1 }
 0x104   : > { %546 = vst [vmem:[%s1018_s11 + $0x38] sm:$0xff] %v854_v48  ;;  %v431_v50 = vpop.f32.mrb[7].mxu0  ;;  %562 = vst [vmem:[%s1018_s11 + $0xb8] sm:$0xff] %v1050_v49  ;;  %v1055_v51 = vpop.f32.mrb[7].mxu1  ;;  %v615_v58 = vmul.f32 %v854_v48, %v854_v48  ;;  %v624_v41 = vmul.f32 %v1025_v27, %v1025_v27 }
 0x105   : > { %v643_v52 = vadd.f32 %v642_v47, %v612_v46  ;;  %544 = vst [vmem:[%s1018_s11 + $0x28] sm:$0xff] %v431_v50  ;;  %v575_v53 = vadd.f32 %v574_v45, %v431_v50  ;;  %v613_v54 = vmul.f32 %v431_v50, %v431_v50  ;;  %560 = vst [vmem:[%s1018_s11 + $0xa8] sm:$0xff] %v1055_v51 }
 0x106   : > { %v626_v50 = vmul.f32 %v1020_v25, %v1020_v25 }
 0x107   : > { %v576_v56 = vadd.f32 %v853_v40, %v575_v53  ;;  %v644_v57 = vadd.f32 %v643_v52, %v613_v54  ;;  %v627_v54 = vmul.f32 %v1030_v29, %v1030_v29 }
 0x109   : > { %v645_v59 = vadd.f32 %v644_v57, %v614_v55  ;;  %v857_v60 = vpop.f32.mrb[8].mxu0  ;;  %v577_v61 = vadd.f32 %v854_v48, %v576_v56  ;;  %v1060_v62 = vpop.f32.mrb[8].mxu1  ;;  %v625_v48 = vmul.f32 %v1035_v31, %v1035_v31 }
 0x10a   : > { %549 = vst [vmem:[%s1018_s11 + $0x50] sm:$0xff] %v857_v60  ;;  %v444_v63 = vpop.f32.mrb[9].mxu0  ;;  %565 = vst [vmem:[%s1018_s11 + $0xd0] sm:$0xff] %v1060_v62  ;;  %v1065_v0 = vpop.f32.mrb[9].mxu1  ;;  %v618_v11 = vmul.f32 %v857_v60, %v857_v60 }
 0x10b   : > { %547 = vst [vmem:[%s1018_s11 + $0x40] sm:$0xff] %v444_v63  ;;  %v578_v1 = vadd.f32 %v577_v61, %v444_v63  ;;  %v616_v2 = vmul.f32 %v444_v63, %v444_v63  ;;  %v646_v3 = vadd.f32 %v645_v59, %v615_v58  ;;  %v858_v4 = vpop.f32.mrb[10].mxu0  ;;  %563 = vst [vmem:[%s1018_s11 + $0xc0] sm:$0xff] %v1065_v0  ;;  %v1070_v5 = vpop.f32.mrb[10].mxu1 }
 0x10c   : > { %550 = vst [vmem:[%s1018_s11 + $0x58] sm:$0xff] %v858_v4  ;;  %v447_v6 = vpop.f32.mrb[11].mxu0  ;;  %566 = vst [vmem:[%s1018_s11 + $0xd8] sm:$0xff] %v1070_v5  ;;  %v1075_v7 = vpop.f32.mrb[11].mxu1  ;;  %v619_v14 = vmul.f32 %v858_v4, %v858_v4 }
 0x10d   : > { %v647_v8 = vadd.f32 %v646_v3, %v616_v2  ;;  %548 = vst [vmem:[%s1018_s11 + $0x48] sm:$0xff] %v447_v6  ;;  %v579_v9 = vadd.f32 %v578_v1, %v447_v6  ;;  %v617_v10 = vmul.f32 %v447_v6, %v447_v6  ;;  %564 = vst [vmem:[%s1018_s11 + $0xc8] sm:$0xff] %v1075_v7 }
 0x10f   : > { %v580_v12 = vadd.f32 %v857_v60, %v579_v9  ;;  %v648_v13 = vadd.f32 %v647_v8, %v617_v10  ;;  %v629_v60 = vmul.f32 %v1055_v51, %v1055_v51  ;;  %v633_v8 = vmul.f32 %v1075_v7, %v1075_v7 }
 0x111   : > { %v649_v15 = vadd.f32 %v648_v13, %v618_v11  ;;  %v861_v16 = vpop.f32.mrb[12].mxu0  ;;  %v581_v17 = vadd.f32 %v858_v4, %v580_v12  ;;  %v1080_v18 = vpop.f32.mrb[12].mxu1 }
 0x112   : > { %553 = vst [vmem:[%s1018_s11 + $0x70] sm:$0xff] %v861_v16  ;;  %v460_v19 = vpop.f32.mrb[13].mxu0  ;;  %569 = vst [vmem:[%s1018_s11 + $0xf0] sm:$0xff] %v1080_v18  ;;  %v524_v20 = vpop.f32.mrb[13].mxu1  ;;  %v622_v35 = vmul.f32 %v861_v16, %v861_v16 }
 0x113   : > { %551 = vst [vmem:[%s1018_s11 + $0x60] sm:$0xff] %v460_v19  ;;  %v582_v21 = vadd.f32 %v581_v17, %v460_v19  ;;  %v620_v22 = vmul.f32 %v460_v19, %v460_v19  ;;  %v650_v23 = vadd.f32 %v649_v15, %v619_v14  ;;  %v862_v24 = vpop.f32.mrb[14].mxu0  ;;  %567 = vst [vmem:[%s1018_s11 + $0xe0] sm:$0xff] %v524_v20  ;;  %v878_v26 = vpop.f32.mrb[14].mxu1 }
 0x114   : > { %554 = vst [vmem:[%s1018_s11 + $0x78] sm:$0xff] %v862_v24  ;;  %v463_v28 = vpop.f32.mrb[15].mxu0  ;;  %570 = vst [vmem:[%s1018_s11 + $0xf8] sm:$0xff] %v878_v26  ;;  %v527_v30 = vpop.f32.mrb[15].mxu1  ;;  %v623_v38 = vmul.f32 %v862_v24, %v862_v24  ;;  %v636_v12 = vmul.f32 %v524_v20, %v524_v20  ;;  %v638_v17 = vmul.f32 %v1080_v18, %v1080_v18 }
 0x115   : > { %v651_v32 = vadd.f32 %v650_v23, %v620_v22  ;;  %552 = vst [vmem:[%s1018_s11 + $0x68] sm:$0xff] %v463_v28  ;;  %v583_v33 = vadd.f32 %v582_v21, %v463_v28  ;;  %v621_v34 = vmul.f32 %v463_v28, %v463_v28  ;;  %568 = vst [vmem:[%s1018_s11 + $0xe8] sm:$0xff] %v527_v30 }
 0x116   : > { %v639_v21 = vmul.f32 %v878_v26, %v878_v26 }
 0x117   : > { %v584_v36 = vadd.f32 %v861_v16, %v583_v33  ;;  %v652_v37 = vadd.f32 %v651_v32, %v621_v34 }
 0x119   : > { %v653_v39 = vadd.f32 %v652_v37, %v622_v35  ;;  %v585_v40 = vadd.f32 %v862_v24, %v584_v36 }
 0x11b   : > { %v586_v43 = vadd.f32 %v585_v40, %v1025_v27  ;;  %v654_v45 = vadd.f32 %v653_v39, %v623_v38  ;;  %v628_v27 = vmul.f32 %v1045_v44, %v1045_v44 }
 0x11d   : > { %v655_v46 = vadd.f32 %v654_v45, %v624_v41  ;;  %v587_v47 = vadd.f32 %v586_v43, %v1035_v31 }
 0x11f   : > { %v588_v52 = vadd.f32 %v1020_v25, %v587_v47  ;;  %v656_v53 = vadd.f32 %v655_v46, %v625_v48  ;;  %v630_v25 = vmul.f32 %v1040_v42, %v1040_v42 }
 0x121   : > { %v657_v55 = vadd.f32 %v656_v53, %v626_v50  ;;  %v589_v56 = vadd.f32 %v1030_v29, %v588_v52  ;;  %v631_v29 = vmul.f32 %v1050_v49, %v1050_v49 }
 0x123   : > { %v590_v57 = vadd.f32 %v589_v56, %v1045_v44  ;;  %v658_v58 = vadd.f32 %v657_v55, %v627_v54  ;;  %v632_v44 = vmul.f32 %v1065_v0, %v1065_v0 }
 0x125   : > { %v659_v59 = vadd.f32 %v658_v58, %v628_v27  ;;  %v591_v31 = vadd.f32 %v590_v57, %v1055_v51 }
 0x127   : > { %v592_v61 = vadd.f32 %v1040_v42, %v591_v31  ;;  %v660_v63 = vadd.f32 %v659_v59, %v629_v60  ;;  %v634_v42 = vmul.f32 %v1060_v62, %v1060_v62 }
 0x129   : > { %v661_v1 = vadd.f32 %v660_v63, %v630_v25  ;;  %v593_v2 = vadd.f32 %v1050_v49, %v592_v61  ;;  %v635_v49 = vmul.f32 %v1070_v5, %v1070_v5 }
 0x12b   : > { %v594_v3 = vadd.f32 %v593_v2, %v1065_v0  ;;  %v662_v4 = vadd.f32 %v661_v1, %v631_v29 }
 0x12d   : > { %v663_v6 = vadd.f32 %v662_v4, %v632_v44  ;;  %v595_v51 = vadd.f32 %v594_v3, %v1075_v7  ;;  %v637_v7 = vmul.f32 %v527_v30, %v527_v30 }
 0x12f   : > { %v596_v9 = vadd.f32 %v1060_v62, %v595_v51  ;;  %v664_v10 = vadd.f32 %v663_v6, %v633_v8 }
 0x131   : > { %v665_v11 = vadd.f32 %v664_v10, %v634_v42  ;;  %v597_v0 = vadd.f32 %v1070_v5, %v596_v9 }
 0x133   : > { %v598_v13 = vadd.f32 %v597_v0, %v524_v20  ;;  %v666_v14 = vadd.f32 %v665_v11, %v635_v49  ;;  %v677_v20 = vlaneseq }
 0x135   : > { %v667_v15 = vadd.f32 %v666_v14, %v636_v12  ;;  %v599_v16 = vadd.f32 %v598_v13, %v527_v30  ;;  %v678_v36 = vshrl.u32 %v677_v20, 7 }
 0x137   : > { %v600_v62 = vadd.f32 %v1080_v18, %v599_v16  ;;  %v668_v19 = vadd.f32 %v667_v15, %v637_v7  ;;  %vm680_vm0 = vcmp.eq.s32.totalorder %v678_v36, 1  ;;  %vm679_vm1 = vcmp.eq.s32.totalorder %v678_v36, 0 }
 0x139   : > { %v601_v22 = vadd.f32 %v878_v26, %v600_v62  ;;  %v669_v23 = vadd.f32 %v668_v19, %v638_v17 }
 0x13b   : > { %v602_v24 = vrot.slane %v601_v22, 4  ;;  %v670_v28 = vadd.f32 %v669_v23, %v639_v21 }
 0x13d   : > { %v603_v5 = vadd.f32 %v602_v24, %v601_v22  ;;  %v671_v32 = vrot.slane %v670_v28, 4 }
 0x13f   : > { %v604_v33 = vrot.slane %v603_v5, 2  ;;  %v672_v34 = vadd.f32 %v671_v32, %v670_v28 }
 0x141   : > { %v605_v35 = vadd.f32 %v604_v33, %v603_v5  ;;  %v673_v30 = vrot.slane %v672_v34, 2 }
 0x143   : > { %v674_v37 = vadd.f32 %v673_v30, %v672_v34  ;;  %v606_v38 = vrot.slane %v605_v35, 1 }
 0x145   : > { %v675_v18 = vrot.slane %v674_v37, 1  ;;  %v607_v26 = vadd.f32 %v606_v38, %v605_v35 }
 0x147   : > { %v676_v39 = vadd.f32 %v675_v18, %v674_v37 }
 0x149   : > { %v681_v40 = vsel %vm680_vm0, %v676_v39, 0.0 }
 0x14a   : > { %v682_v41 = vsel %vm679_vm1, %v607_v26, %v681_v40 }
 0x14b   : > { %683 = vst [vmem:[%s184_s17] sm:$0xff] %v682_v41 }
 0x14c PF: > { %s14_s12 = sadd.s32 1, %s933_s12  }
 0x14d   : > { %p11_p5 = scmp.ge.s32.totalorder %s14_s12, 4  }
 0x14f   :  { %13 = sbr.rel (!%p11_p5) target bundleno = 1 (0x1), region = 70 }

// kernel: cbam2_forward.25
= control target key start
LH: loop header
LB: loop body
LE: loop exit
PB: predicated region body
PF: predicated region fallthrough
CT: control target
= control target key end

     0   :  { %s741_s12 = smov 0   ;;  %s910_s0 = inlined_call_operand.vmem [shape: f32[512,128], index: 0, kind: input, shape index: {}]   ;;  %s911_s1 = inlined_call_operand.vmem [shape: f32[1,128], index: 1, kind: input, shape index: {}]   ;;  %s912_s2 = inlined_call_operand.vmem [shape: f32[1,128], index: 2, kind: input, shape index: {}]   ;;  %s913_s3 = inlined_call_operand.vmem [shape: f32[512,128], index: 3, kind: output, shape index: {}]  }
   0x1 LB: > { %s564_s13 = sadd.s32 4294967295, %s719_s12   ;;  %p568_p0 = scmp.ge.s32.totalorder %s719_s12, 1  ;;  %s719_s12 = sphi %s741_s12, %s13_s12  }
   0x2   : > { %p138_p1 = scmp.lt.s32.totalorder %s719_s12, 3 }
   0x4   : > { %p139_p2 = pnand %p568_p0, %p138_p1 }
   0x5   : > { %s569_s14 = sshll.u32 (!%p139_p2), %s564_s13, 5  ;;  %v755_v0 = vld [vmem:[%s911_s1] ss:$0 sm:$0xff] (!%p139_p2) }
   0x6   : > { %142 = sbr.rel (%p139_p2) target bundleno = 107 (0x6b), region = 32  ;;  %p163_p3 = scmp.lt.s32.totalorder (!%p139_p2), %s569_s14, 63  ;;  %v767_v1 = vld [vmem:[%s912_s2] ss:$0 sm:$0xff] (!%p139_p2) }
   0xd   : > { %s915_s14 = smov (!%p163_p3, %s569_s14), 63 }
   0xe   : > { %s570_s15 = sshll.u32 %s915_s14, 3 }
   0xf   : > { %s762_s20 = scalar_lea.vmem %s910_s0, %s570_s15  ;;  %s842_s25 = scalar_lea.vmem %s913_s3, %s570_s15 }
  0x10   : > { %v174_v2 = vld [vmem:[%s762_s20] sm:$0xff]  ;;  %v175_v3 = vld [vmem:[%s762_s20 + $0x8] sm:$0xff]  ;;  %v176_v4 = vld [vmem:[%s762_s20 + $0x10] sm:$0xff] }
  0x11   : > { %v213_v5 = vmul.f32 %v755_v0, %v174_v2  ;;  %v214_v6 = vmul.f32 %v755_v0, %v175_v3  ;;  %v215_v7 = vmul.f32 %v755_v0, %v176_v4  ;;  %v177_v8 = vld [vmem:[%s762_s20 + $0x18] sm:$0xff]  ;;  %v178_v9 = vld [vmem:[%s762_s20 + $0x20] sm:$0xff]  ;;  %v179_v10 = vld [vmem:[%s762_s20 + $0x28] sm:$0xff] }
  0x12   : > { %v216_v11 = vmul.f32 %v755_v0, %v177_v8  ;;  %v217_v12 = vmul.f32 %v755_v0, %v178_v9  ;;  %v218_v13 = vmul.f32 %v755_v0, %v179_v10  ;;  %v180_v14 = vld [vmem:[%s762_s20 + $0x30] sm:$0xff]  ;;  %v181_v15 = vld [vmem:[%s762_s20 + $0x38] sm:$0xff]  ;;  %v182_v24 = vld [vmem:[%s762_s20 + $0x40] sm:$0xff] }
  0x13   : > { %v252_v16 = vadd.f32 %v767_v1, %v213_v5  ;;  %v253_v17 = vadd.f32 %v767_v1, %v214_v6  ;;  %v254_v18 = vadd.f32 %v767_v1, %v215_v7  ;;  %v219_v19 = vmul.f32 %v755_v0, %v180_v14  ;;  %v183_v29 = vld [vmem:[%s762_s20 + $0x48] sm:$0xff]  ;;  %v184_v34 = vld [vmem:[%s762_s20 + $0x50] sm:$0xff]  ;;  %v185_v35 = vld [vmem:[%s762_s20 + $0x58] sm:$0xff] }
  0x14   : > { %v255_v20 = vadd.f32 %v767_v1, %v216_v11  ;;  %v256_v21 = vadd.f32 %v767_v1, %v217_v12  ;;  %v257_v22 = vadd.f32 %v767_v1, %v218_v13  ;;  %v220_v23 = vmul.f32 %v755_v0, %v181_v15  ;;  %v186_v50 = vld [vmem:[%s762_s20 + $0x60] sm:$0xff]  ;;  %v187_v51 = vld [vmem:[%s762_s20 + $0x68] sm:$0xff]  ;;  %v188_v58 = vld [vmem:[%s762_s20 + $0x70] sm:$0xff] }
  0x15   : > { %v284_v25 = vsub.f32 0.0, %v252_v16  ;;  %v285_v26 = vsub.f32 0.0, %v253_v17  ;;  %v286_v27 = vsub.f32 0.0, %v254_v18  ;;  %v258_v28 = vadd.f32 %v767_v1, %v219_v19  ;;  %v189_v62 = vld [vmem:[%s762_s20 + $0x78] sm:$0xff]  ;;  %v190_v7 = vld [vmem:[%s762_s20 + $0x80] sm:$0xff]  ;;  %v191_v13 = vld [vmem:[%s762_s20 + $0x88] sm:$0xff] }
  0x16   : > { %v287_v30 = vsub.f32 0.0, %v255_v20  ;;  %v288_v31 = vsub.f32 0.0, %v256_v21  ;;  %v289_v32 = vsub.f32 0.0, %v257_v22  ;;  %v259_v33 = vadd.f32 %v767_v1, %v220_v23 }
  0x17   : > { %v316_v36 = vmul.f32 1.442695, %v284_v25  ;;  %v318_v37 = vmul.f32 1.442695, %v285_v26  ;;  %v320_v38 = vmul.f32 1.442695, %v286_v27  ;;  %v221_v39 = vmul.f32 %v755_v0, %v182_v24 }
  0x18   : > { %v322_v40 = vmul.f32 1.442695, %v287_v30  ;;  %v324_v41 = vmul.f32 1.442695, %v288_v31  ;;  %v326_v42 = vmul.f32 1.442695, %v289_v32  ;;  %v222_v43 = vmul.f32 %v755_v0, %v183_v29 }
  0x19   : > { %585 = vpow2.f32 %v316_v36  ;;  %v290_v44 = vsub.f32 0.0, %v258_v28  ;;  %v291_v45 = vsub.f32 0.0, %v259_v33  ;;  %v260_v46 = vadd.f32 %v767_v1, %v221_v39  ;;  %v192_v24 = vld [vmem:[%s762_s20 + $0x90] sm:$0xff]  ;;  %v193_v28 = vld [vmem:[%s762_s20 + $0x98] sm:$0xff]  ;;  %v194_v33 = vld [vmem:[%s762_s20 + $0xa0] sm:$0xff] }
  0x1a   : > { %587 = vpow2.f32 %v318_v37  ;;  %v261_v47 = vadd.f32 %v767_v1, %v222_v43  ;;  %v223_v48 = vmul.f32 %v755_v0, %v184_v34  ;;  %v224_v49 = vmul.f32 %v755_v0, %v185_v35 }
  0x1b   : > { %589 = vpow2.f32 %v320_v38  ;;  %v328_v52 = vmul.f32 1.442695, %v290_v44  ;;  %v330_v53 = vmul.f32 1.442695, %v291_v45  ;;  %v292_v54 = vsub.f32 0.0, %v260_v46  ;;  %v195_v38 = vld [vmem:[%s762_s20 + $0xa8] sm:$0xff] }
  0x1c   : > { %591 = vpow2.f32 %v322_v40  ;;  %v293_v55 = vsub.f32 0.0, %v261_v47  ;;  %v262_v56 = vadd.f32 %v767_v1, %v223_v48  ;;  %v263_v57 = vadd.f32 %v767_v1, %v224_v49 }
  0x1d   : > { %593 = vpow2.f32 %v324_v41  ;;  %v332_v59 = vmul.f32 1.442695, %v292_v54  ;;  %v225_v60 = vmul.f32 %v755_v0, %v186_v50  ;;  %v226_v61 = vmul.f32 %v755_v0, %v187_v51 }
  0x1e   : > { %595 = vpow2.f32 %v326_v42  ;;  %v334_v63 = vmul.f32 1.442695, %v293_v55  ;;  %v294_v2 = vsub.f32 0.0, %v262_v56  ;;  %v295_v3 = vsub.f32 0.0, %v263_v57  ;;  %v196_v55 = vld [vmem:[%s762_s20 + $0xb0] sm:$0xff] }
  0x1f   : > { %597 = vpow2.f32 %v328_v52  ;;  %v264_v4 = vadd.f32 %v767_v1, %v225_v60  ;;  %v265_v5 = vadd.f32 %v767_v1, %v226_v61  ;;  %v227_v6 = vmul.f32 %v755_v0, %v188_v58  ;;  %v197_v60 = vld [vmem:[%s762_s20 + $0xb8] sm:$0xff] }
  0x20   : > { %599 = vpow2.f32 %v330_v53  ;;  %v336_v8 = vmul.f32 1.442695, %v294_v2  ;;  %v338_v9 = vmul.f32 1.442695, %v295_v3  ;;  %v228_v10 = vmul.f32 %v755_v0, %v189_v62  ;;  %v198_v3 = vld [vmem:[%s762_s20 + $0xc0] sm:$0xff] }
  0x21   : > { %601 = vpow2.f32 %v332_v59  ;;  %v296_v11 = vsub.f32 0.0, %v264_v4  ;;  %v229_v12 = vmul.f32 %v755_v0, %v190_v7  ;;  %v297_v16 = vsub.f32 0.0, %v265_v5 }
  0x22   : > { %603 = vpow2.f32 %v334_v63  ;;  %v266_v17 = vadd.f32 %v767_v1, %v227_v6  ;;  %v267_v20 = vadd.f32 %v767_v1, %v228_v10  ;;  %v230_v23 = vmul.f32 %v755_v0, %v191_v13 }
  0x23   : > { %v586_v14 = vpop.eup %585  ;;  %605 = vpow2.f32 %v336_v8  ;;  %v340_v15 = vmul.f32 1.442695, %v296_v11  ;;  %v268_v27 = vadd.f32 %v767_v1, %v229_v12  ;;  %v824_v31 = vmul.f32 1.442695, %v297_v16  ;;  %v199_v8 = vld [vmem:[%s762_s20 + $0xc8] sm:$0xff] }
  0x24   : > { %v588_v18 = vpop.eup %587  ;;  %v380_v19 = vadd.f32 1.0, %v586_v14  ;;  %607 = vpow2.f32 %v338_v9  ;;  %v298_v32 = vsub.f32 0.0, %v266_v17  ;;  %v299_v36 = vsub.f32 0.0, %v267_v20 }
  0x25   : > { %v590_v21 = vpop.eup %589  ;;  %v381_v22 = vadd.f32 1.0, %v588_v18  ;;  %609 = vpow2.f32 %v340_v15  ;;  %v231_v37 = vmul.f32 %v755_v0, %v192_v24  ;;  %v269_v41 = vadd.f32 %v767_v1, %v230_v23 }
  0x26   : > { %v592_v25 = vpop.eup %591  ;;  %611 = vrcp.f32 %v380_v19  ;;  %v382_v26 = vadd.f32 1.0, %v590_v21  ;;  %v232_v42 = vmul.f32 %v755_v0, %v193_v28  ;;  %v300_v45 = vsub.f32 0.0, %v268_v27 }
  0x27   : > { %v594_v29 = vpop.eup %593  ;;  %613 = vrcp.f32 %v381_v22  ;;  %v383_v30 = vadd.f32 1.0, %v592_v25  ;;  %v233_v46 = vmul.f32 %v755_v0, %v194_v33  ;;  %v344_v49 = vmul.f32 1.442695, %v298_v32 }
  0x28   : > { %v596_v34 = vpop.eup %595  ;;  %615 = vrcp.f32 %v382_v26  ;;  %v384_v35 = vadd.f32 1.0, %v594_v29  ;;  %v234_v50 = vmul.f32 %v755_v0, %v195_v38  ;;  %v346_v53 = vmul.f32 1.442695, %v299_v36 }
  0x29   : > { %v598_v39 = vpop.eup %597  ;;  %617 = vrcp.f32 %v383_v30  ;;  %v385_v40 = vadd.f32 1.0, %v596_v34  ;;  %v270_v54 = vadd.f32 %v767_v1, %v231_v37  ;;  %v301_v58 = vsub.f32 0.0, %v269_v41 }
  0x2a   : > { %v600_v43 = vpop.eup %599  ;;  %619 = vrcp.f32 %v384_v35  ;;  %v386_v44 = vadd.f32 1.0, %v598_v39  ;;  %v271_v59 = vadd.f32 %v767_v1, %v232_v42  ;;  %v348_v63 = vmul.f32 1.442695, %v300_v45 }
  0x2b   : > { %v602_v47 = vpop.eup %601  ;;  %621 = vrcp.f32 %v385_v40  ;;  %v387_v48 = vadd.f32 1.0, %v600_v43  ;;  %v272_v2 = vadd.f32 %v767_v1, %v233_v46  ;;  %v273_v6 = vadd.f32 %v767_v1, %v234_v50 }
  0x2c   : > { %v604_v51 = vpop.eup %603  ;;  %623 = vrcp.f32 %v386_v44  ;;  %v388_v52 = vadd.f32 1.0, %v602_v47  ;;  %v235_v7 = vmul.f32 %v755_v0, %v196_v55  ;;  %v302_v11 = vsub.f32 0.0, %v270_v54  ;;  %v200_v44 = vld [vmem:[%s762_s20 + $0xd0] sm:$0xff]  ;;  %v201_v47 = vld [vmem:[%s762_s20 + $0xd8] sm:$0xff] }
  0x2d   : > { %v606_v56 = vpop.eup %605  ;;  %625 = vrcp.f32 %v387_v48  ;;  %v389_v57 = vadd.f32 1.0, %v604_v51  ;;  %v236_v12 = vmul.f32 %v755_v0, %v197_v60  ;;  %v303_v14 = vsub.f32 0.0, %v271_v59  ;;  %v205_v60 = vld [vmem:[%s762_s20 + $0xf8] sm:$0xff] }
  0x2e   : > { %v608_v61 = vpop.eup %607  ;;  %627 = vrcp.f32 %v388_v52  ;;  %v390_v62 = vadd.f32 1.0, %v606_v56  ;;  %v274_v15 = vadd.f32 %v767_v1, %v235_v7  ;;  %v237_v16 = vmul.f32 %v755_v0, %v198_v3  ;;  %v203_v52 = vld [vmem:[%s762_s20 + $0xe8] sm:$0xff]  ;;  %v204_v56 = vld [vmem:[%s762_s20 + $0xf0] sm:$0xff] }
  0x2f   : > { %v610_v4 = vpop.eup %609  ;;  %629 = vrcp.f32 %v389_v57  ;;  %v391_v5 = vadd.f32 1.0, %v608_v61  ;;  %v304_v18 = vsub.f32 0.0, %v272_v2  ;;  %v275_v19 = vadd.f32 %v767_v1, %v236_v12 }
  0x30   : > { %v612_v9 = vpop.eup %611  ;;  %631 = vrcp.f32 %v390_v62  ;;  %v392_v10 = vadd.f32 1.0, %v610_v4  ;;  %v238_v20 = vmul.f32 %v755_v0, %v199_v8  ;;  %v350_v22 = vmul.f32 1.442695, %v301_v58 }
  0x31   : > { %v614_v13 = vpop.eup %613  ;;  %476 = vst [vmem:[%s842_s25] sm:$0xff] %v612_v9  ;;  %633 = vrcp.f32 %v391_v5  ;;  %v305_v23 = vsub.f32 0.0, %v273_v6  ;;  %v276_v24 = vadd.f32 %v767_v1, %v237_v16  ;;  %v352_v26 = vmul.f32 1.442695, %v302_v11 }
  0x32   : > { %v616_v17 = vpop.eup %615  ;;  %477 = vst [vmem:[%s842_s25 + $0x8] sm:$0xff] %v614_v13  ;;  %635 = vrcp.f32 %v392_v10  ;;  %v306_v27 = vsub.f32 0.0, %v274_v15  ;;  %v277_v28 = vadd.f32 %v767_v1, %v238_v20  ;;  %v354_v30 = vmul.f32 1.442695, %v303_v14 }
  0x33   : > { %v618_v21 = vpop.eup %617  ;;  %478 = vst [vmem:[%s842_s25 + $0x10] sm:$0xff] %v616_v17  ;;  %637 = vpow2.f32 %v824_v31  ;;  %v307_v32 = vsub.f32 0.0, %v275_v19  ;;  %v356_v33 = vmul.f32 1.442695, %v304_v18  ;;  %v308_v34 = vsub.f32 0.0, %v276_v24 }
  0x34   : > { %v620_v25 = vpop.eup %619  ;;  %479 = vst [vmem:[%s842_s25 + $0x18] sm:$0xff] %v618_v21  ;;  %639 = vpow2.f32 %v344_v49  ;;  %v358_v36 = vmul.f32 1.442695, %v305_v23  ;;  %v309_v37 = vsub.f32 0.0, %v277_v28  ;;  %v360_v39 = vmul.f32 1.442695, %v306_v27 }
  0x35   : > { %v622_v29 = vpop.eup %621  ;;  %480 = vst [vmem:[%s842_s25 + $0x20] sm:$0xff] %v620_v25  ;;  %641 = vpow2.f32 %v346_v53  ;;  %v362_v41 = vmul.f32 1.442695, %v307_v32  ;;  %v364_v43 = vmul.f32 1.442695, %v308_v34  ;;  %v202_v49 = vld [vmem:[%s762_s20 + $0xe0] sm:$0xff]  ;;  %v239_v51 = vmul.f32 %v755_v0, %v200_v44 }
  0x36   : > { %v624_v31 = vpop.eup %623  ;;  %481 = vst [vmem:[%s842_s25 + $0x28] sm:$0xff] %v622_v29  ;;  %643 = vpow2.f32 %v348_v63  ;;  %v366_v46 = vmul.f32 1.442695, %v309_v37  ;;  %v240_v55 = vmul.f32 %v755_v0, %v201_v47  ;;  %v241_v59 = vmul.f32 %v755_v0, %v202_v49 }
  0x37   : > { %v626_v35 = vpop.eup %625  ;;  %482 = vst [vmem:[%s842_s25 + $0x30] sm:$0xff] %v624_v31  ;;  %645 = vpow2.f32 %v350_v22  ;;  %v242_v63 = vmul.f32 %v755_v0, %v203_v52  ;;  %v278_v4 = vadd.f32 %v767_v1, %v239_v51  ;;  %v243_v5 = vmul.f32 %v755_v0, %v204_v56 }
  0x38   : > { %v628_v38 = vpop.eup %627  ;;  %483 = vst [vmem:[%s842_s25 + $0x38] sm:$0xff] %v626_v35  ;;  %647 = vpow2.f32 %v352_v26  ;;  %v279_v8 = vadd.f32 %v767_v1, %v240_v55  ;;  %v244_v9 = vmul.f32 %v755_v0, %v205_v60  ;;  %v280_v12 = vadd.f32 %v767_v1, %v241_v59 }
  0x39   : > { %v630_v40 = vpop.eup %629  ;;  %484 = vst [vmem:[%s842_s25 + $0x40] sm:$0xff] %v628_v38  ;;  %649 = vpow2.f32 %v354_v30  ;;  %v281_v15 = vadd.f32 %v767_v1, %v242_v63  ;;  %v310_v18 = vsub.f32 0.0, %v278_v4  ;;  %v282_v19 = vadd.f32 %v767_v1, %v243_v5 }
  0x3a   : > { %v632_v42 = vpop.eup %631  ;;  %485 = vst [vmem:[%s842_s25 + $0x48] sm:$0xff] %v630_v40  ;;  %651 = vpow2.f32 %v356_v33  ;;  %v311_v0 = vsub.f32 0.0, %v279_v8  ;;  %v283_v22 = vadd.f32 %v767_v1, %v244_v9  ;;  %v312_v25 = vsub.f32 0.0, %v280_v12 }
  0x3b   : > { %v634_v45 = vpop.eup %633  ;;  %486 = vst [vmem:[%s842_s25 + $0x50] sm:$0xff] %v632_v42  ;;  %653 = vpow2.f32 %v358_v36  ;;  %v313_v28 = vsub.f32 0.0, %v281_v15  ;;  %v368_v32 = vmul.f32 1.442695, %v310_v18  ;;  %v314_v31 = vsub.f32 0.0, %v282_v19 }
  0x3c   : > { %v636_v48 = vpop.eup %635  ;;  %487 = vst [vmem:[%s842_s25 + $0x58] sm:$0xff] %v634_v45  ;;  %655 = vpow2.f32 %v360_v39  ;;  %v370_v1 = vmul.f32 1.442695, %v311_v0  ;;  %v315_v35 = vsub.f32 0.0, %v283_v22  ;;  %v372_v37 = vmul.f32 1.442695, %v312_v25 }
  0x3d   : > { %v638_v50 = vpop.eup %637  ;;  %488 = vst [vmem:[%s842_s25 + $0x60] sm:$0xff] %v636_v48  ;;  %657 = vpow2.f32 %v362_v41  ;;  %v374_v39 = vmul.f32 1.442695, %v313_v28  ;;  %v376_v41 = vmul.f32 1.442695, %v314_v31 }
  0x3e   : > { %v640_v53 = vpop.eup %639  ;;  %v393_v54 = vadd.f32 1.0, %v638_v50  ;;  %659 = vpow2.f32 %v364_v43  ;;  %v378_v43 = vmul.f32 1.442695, %v315_v35 }
  0x3f   : > { %v642_v57 = vpop.eup %641  ;;  %v394_v58 = vadd.f32 1.0, %v640_v53  ;;  %661 = vpow2.f32 %v366_v46 }
  0x40   : > { %v644_v61 = vpop.eup %643  ;;  %663 = vrcp.f32 %v393_v54  ;;  %v395_v62 = vadd.f32 1.0, %v642_v57 }
  0x41   : > { %v646_v2 = vpop.eup %645  ;;  %665 = vrcp.f32 %v394_v58  ;;  %v396_v3 = vadd.f32 1.0, %v644_v61 }
  0x42   : > { %v648_v6 = vpop.eup %647  ;;  %667 = vrcp.f32 %v395_v62  ;;  %v397_v7 = vadd.f32 1.0, %v646_v2 }
  0x43   : > { %v650_v10 = vpop.eup %649  ;;  %669 = vrcp.f32 %v396_v3  ;;  %v398_v11 = vadd.f32 1.0, %v648_v6 }
  0x44   : > { %v652_v13 = vpop.eup %651  ;;  %671 = vrcp.f32 %v397_v7  ;;  %v399_v14 = vadd.f32 1.0, %v650_v10 }
  0x45   : > { %v654_v16 = vpop.eup %653  ;;  %673 = vrcp.f32 %v398_v11  ;;  %v400_v17 = vadd.f32 1.0, %v652_v13 }
  0x46   : > { %v656_v20 = vpop.eup %655  ;;  %675 = vrcp.f32 %v399_v14  ;;  %v401_v21 = vadd.f32 1.0, %v654_v16 }
  0x47   : > { %v658_v23 = vpop.eup %657  ;;  %677 = vrcp.f32 %v400_v17  ;;  %v402_v24 = vadd.f32 1.0, %v656_v20 }
  0x48   : > { %v660_v26 = vpop.eup %659  ;;  %679 = vrcp.f32 %v401_v21  ;;  %v403_v27 = vadd.f32 1.0, %v658_v23 }
  0x49   : > { %v662_v29 = vpop.eup %661  ;;  %681 = vrcp.f32 %v402_v24  ;;  %v404_v30 = vadd.f32 1.0, %v660_v26 }
  0x4a   : > { %v664_v33 = vpop.eup %663  ;;  %683 = vrcp.f32 %v403_v27  ;;  %v405_v34 = vadd.f32 1.0, %v662_v29 }
  0x4b   : > { %v666_v36 = vpop.eup %665  ;;  %489 = vst [vmem:[%s842_s25 + $0x68] sm:$0xff] %v664_v33  ;;  %685 = vrcp.f32 %v404_v30 }
  0x4c   : > { %v668_v38 = vpop.eup %667  ;;  %490 = vst [vmem:[%s842_s25 + $0x70] sm:$0xff] %v666_v36  ;;  %687 = vrcp.f32 %v405_v34 }
  0x4d   : > { %v670_v40 = vpop.eup %669  ;;  %491 = vst [vmem:[%s842_s25 + $0x78] sm:$0xff] %v668_v38  ;;  %689 = vpow2.f32 %v368_v32 }
  0x4e   : > { %v672_v42 = vpop.eup %671  ;;  %492 = vst [vmem:[%s842_s25 + $0x80] sm:$0xff] %v670_v40  ;;  %691 = vpow2.f32 %v370_v1 }
  0x4f   : > { %v674_v44 = vpop.eup %673  ;;  %493 = vst [vmem:[%s842_s25 + $0x88] sm:$0xff] %v672_v42  ;;  %693 = vpow2.f32 %v372_v37 }
  0x50   : > { %v676_v45 = vpop.eup %675  ;;  %494 = vst [vmem:[%s842_s25 + $0x90] sm:$0xff] %v674_v44  ;;  %695 = vpow2.f32 %v374_v39 }
  0x51   : > { %v678_v46 = vpop.eup %677  ;;  %495 = vst [vmem:[%s842_s25 + $0x98] sm:$0xff] %v676_v45  ;;  %697 = vpow2.f32 %v376_v41 }
  0x52   : > { %v680_v47 = vpop.eup %679  ;;  %496 = vst [vmem:[%s842_s25 + $0xa0] sm:$0xff] %v678_v46  ;;  %699 = vpow2.f32 %v378_v43 }
  0x53   : > { %v682_v48 = vpop.eup %681  ;;  %497 = vst [vmem:[%s842_s25 + $0xa8] sm:$0xff] %v680_v47 }
  0x54   : > { %v684_v49 = vpop.eup %683  ;;  %498 = vst [vmem:[%s842_s25 + $0xb0] sm:$0xff] %v682_v48 }
  0x55   : > { %v686_v50 = vpop.eup %685  ;;  %499 = vst [vmem:[%s842_s25 + $0xb8] sm:$0xff] %v684_v49 }
  0x56   : > { %v688_v51 = vpop.eup %687  ;;  %500 = vst [vmem:[%s842_s25 + $0xc0] sm:$0xff] %v686_v50 }
  0x57   : > { %v690_v52 = vpop.eup %689  ;;  %501 = vst [vmem:[%s842_s25 + $0xc8] sm:$0xff] %v688_v51 }
  0x58   : > { %v692_v53 = vpop.eup %691  ;;  %v406_v54 = vadd.f32 1.0, %v690_v52 }
  0x59   : > { %v694_v55 = vpop.eup %693  ;;  %v407_v56 = vadd.f32 1.0, %v692_v53 }
  0x5a   : > { %v696_v57 = vpop.eup %695  ;;  %701 = vrcp.f32 %v406_v54  ;;  %v408_v58 = vadd.f32 1.0, %v694_v55 }
  0x5b   : > { %v698_v59 = vpop.eup %697  ;;  %703 = vrcp.f32 %v407_v56  ;;  %v409_v60 = vadd.f32 1.0, %v696_v57 }
  0x5c   : > { %v700_v61 = vpop.eup %699  ;;  %705 = vrcp.f32 %v408_v58  ;;  %v410_v62 = vadd.f32 1.0, %v698_v59 }
  0x5d   : > { %707 = vrcp.f32 %v409_v60  ;;  %v411_v63 = vadd.f32 1.0, %v700_v61 }
  0x5e   : > { %709 = vrcp.f32 %v410_v62 }
  0x5f   : > { %711 = vrcp.f32 %v411_v63 }
  0x64   : > { %v702_v2 = vpop.eup %701 }
  0x65   : > { %v704_v3 = vpop.eup %703  ;;  %502 = vst [vmem:[%s842_s25 + $0xd0] sm:$0xff] %v702_v2 }
  0x66   : > { %v706_v4 = vpop.eup %705  ;;  %503 = vst [vmem:[%s842_s25 + $0xd8] sm:$0xff] %v704_v3 }
  0x67   : > { %v708_v5 = vpop.eup %707  ;;  %504 = vst [vmem:[%s842_s25 + $0xe0] sm:$0xff] %v706_v4 }
  0x68   : > { %v710_v6 = vpop.eup %709  ;;  %505 = vst [vmem:[%s842_s25 + $0xe8] sm:$0xff] %v708_v5 }
  0x69   : > { %v712_v7 = vpop.eup %711  ;;  %506 = vst [vmem:[%s842_s25 + $0xf0] sm:$0xff] %v710_v6 }
  0x6a   : > { %507 = vst [vmem:[%s842_s25 + $0xf8] sm:$0xff] %v712_v7 }
  0x6b PF: > { %s13_s12 = sadd.s32 1, %s719_s12  }
  0x6c   : > { %p10_p4 = scmp.ge.s32.totalorder %s13_s12, 4  }
  0x6e   :  { %12 = sbr.rel (!%p10_p4) target bundleno = 1 (0x1), region = 62 }

</bundles_post_ra>
